<compile_context>
chip_gen: v5e
topology: v5e:2x2
jax: 0.10.0
libtpu: 0.0.40
codegen_flags: <defaults>
</compile_context>

<pallas_src>
import functools
import math

import jax
import jax.numpy as jnp
from jax.experimental import pallas as pl
from jax.experimental.pallas import tpu as pltpu

EPS = 1e-5  # PyTorch nn.LayerNorm default eps


def _round_up(a, b):
    return (a + b - 1) // b * b


def _pad2(a, rows, cols):
    r, c = a.shape
    return jnp.pad(a, ((0, rows - r), (0, cols - c)))


def _row_tile(n):
    # <=512 rows: one 8-aligned tile. Larger: 512-row 'parallel' tiles
    # (128-row blocks only reach ~29% of HBM roofline vs ~85% at 512).
    if n <= 512:
        return _round_up(n, 8)
    return 512


# ---------------------------------------------------------------------------
# In-kernel helpers
# ---------------------------------------------------------------------------

def _layernorm(x, g, b, d_real):
    """LayerNorm over the first d_real lanes; padded lanes of x must be zero and
    padded lanes of g/b are zero, so padded output lanes remain zero."""
    inv_d = 1.0 / float(d_real)
    mu = jnp.sum(x, axis=-1, keepdims=True) * inv_d
    var = jnp.maximum(jnp.sum(x * x, axis=-1, keepdims=True) * inv_d - mu * mu, 0.0)
    return (x - mu) * jax.lax.rsqrt(var + EPS) * g + b


# ---------------------------------------------------------------------------
# Kernel 1: fused MLP  (LayerNorm -> Linear -> ReLU -> Linear [-> sigmoid])
#   used for vertex_input, edge_input and vertex_out.
# ---------------------------------------------------------------------------

def _mlp_kernel(x_ref, g_ref, bln_ref, w1_ref, b1_ref, w2_ref, b2_ref, o_ref,
                *, d_in, act_out):
    x = x_ref[...]                                   # (TR, DIN_P) f32
    xn = _layernorm(x, g_ref[...], bln_ref[...], d_in)
    h = jnp.dot(xn, w1_ref[...], preferred_element_type=jnp.float32) + b1_ref[...]
    h = jnp.maximum(h, 0.0)                          # ReLU (dropout = identity, eval)
    y = jnp.dot(h, w2_ref[...], preferred_element_type=jnp.float32) + b2_ref[...]
    if act_out == "sigmoid":
        y = jax.nn.sigmoid(y)
    o_ref[...] = y


def pallas_mlp(x, mp, *, d_in, act_out, row_tile):
    m_p, din_p = x.shape
    dh_p = mp["w1"].shape[1]
    dout_p = mp["w2"].shape[1]
    grid = (m_p // row_tile,)
    kernel = functools.partial(_mlp_kernel, d_in=d_in, act_out=act_out)
    return pl.pallas_call(
        kernel,
        grid=grid,
        in_specs=[
            pl.BlockSpec((row_tile, din_p), lambda i: (i, 0)),
            pl.BlockSpec((1, din_p), lambda i: (0, 0)),
            pl.BlockSpec((1, din_p), lambda i: (0, 0)),
            pl.BlockSpec((din_p, dh_p), lambda i: (0, 0)),
            pl.BlockSpec((1, dh_p), lambda i: (0, 0)),
            pl.BlockSpec((dh_p, dout_p), lambda i: (0, 0)),
            pl.BlockSpec((1, dout_p), lambda i: (0, 0)),
        ],
        out_specs=pl.BlockSpec((row_tile, dout_p), lambda i: (i, 0)),
        out_shape=jax.ShapeDtypeStruct((m_p, dout_p), jnp.float32),
        compiler_params=pltpu.CompilerParams(dimension_semantics=("parallel",)),
    )(x, mp["ln_g"], mp["ln_b"], mp["w1"], mp["b1"], mp["w2"], mp["b2"])


# ---------------------------------------------------------------------------
# Kernel 2: the full UniEGNNConv stack, fused into a single pallas_call.
#   All per-layer weights are stacked along a leading layer axis; every
#   operand is fully VMEM-resident (no grid => no double-buffering); the layer
#   loop is unrolled at trace time.  Only the final X leaves the kernel.
# ---------------------------------------------------------------------------

def _conv_stack_kernel(x_ref, y_ref, hv_ref, hte_ref,
                       tv_w, tv_b, te_w, te_b,
                       em_wa, em_wb, em_b,
                       vm_wa, vm_wb, vm_b,
                       lnv_g, lnv_b, lne_g, lne_b,
                       xo_ref, *, nlayer, nhid):
    X = x_ref[...]                                   # (NV_P, HP) f32
    Y = y_ref[...]                                   # (NE_P, HP) f32
    # Incidence matrices are stored bf16 in HBM (half the DMA). Upcast ONCE,
    # outside the layer loop; dots stay f32 x f32 (bf16 dots are unsupported by
    # the CPU/interpret DotThunk, and the MXU is not the bottleneck here).
    Hv = hv_ref[...].astype(jnp.float32)             # (NV_P, NE_P)  H * 1/deg_v
    HTe = hte_ref[...].astype(jnp.float32)           # (NE_P, NV_P)  H.T * 1/deg_e

    for l in range(nlayer):
        X0, Y0 = X, Y
        # X = theta_vertex(X)
        Xv = jnp.dot(X, tv_w[l], preferred_element_type=jnp.float32) + tv_b[l]
        # v2e mean aggregation: (H.T / deg_e) @ Xv
        v2e = jnp.dot(HTe, Xv, preferred_element_type=jnp.float32)
        # Y = edge_merge(cat([Y0, v2e]))  ==  Y0 @ Wa + v2e @ Wb + b
        Y = (jnp.dot(Y0, em_wa[l], preferred_element_type=jnp.float32)
             + jnp.dot(v2e, em_wb[l], preferred_element_type=jnp.float32)
             + em_b[l])
        # Y = theta_edge(Y)
        Y = jnp.dot(Y, te_w[l], preferred_element_type=jnp.float32) + te_b[l]
        # e2v mean aggregation: (H / deg_v) @ Y
        e2v = jnp.dot(Hv, Y, preferred_element_type=jnp.float32)
        # X = vertex_merge(cat([X0, e2v]))
        X = (jnp.dot(X0, vm_wa[l], preferred_element_type=jnp.float32)
             + jnp.dot(e2v, vm_wb[l], preferred_element_type=jnp.float32)
             + vm_b[l])
        # LayerNorm + ReLU (dropout = identity, fix_edge=False)
        X = jnp.maximum(_layernorm(X, lnv_g[l], lnv_b[l], nhid), 0.0)
        if l < nlayer - 1:
            # Final Y is never consumed -> skip the dead last-layer LN_e + ReLU.
            Y = jnp.maximum(_layernorm(Y, lne_g[l], lne_b[l], nhid), 0.0)

    xo_ref[...] = X


def _conv_vmem_limit(nv_p, ne_p, hp, nlayer):
    # Resident refs + in-kernel temporaries, with 2x margin.
    h_refs = 2 * nv_p * ne_p * 2                 # Hv + HTe (bf16)
    h_f32 = 2 * nv_p * ne_p * 4                  # hoisted f32 upcasts
    xy = 3 * (nv_p + ne_p) * hp * 4              # X, Y refs + live copies
    w = nlayer * (6 * hp * hp + 8 * hp) * 4      # stacked conv weights (f32)
    tmp = 4 * (nv_p + ne_p) * hp * 4             # Xv, v2e, e2v, merge temporaries
    out = nv_p * hp * 4
    need = h_refs + h_f32 + xy + w + tmp + out
    # Floor 32 MiB; cap 48 MiB so the budget is valid on v7x (64 MiB/TC) too.
    # Graphs that exceed this need a streamed Hv/HTe path (see header note).
    return int(min(max(2 * need, 32 << 20), 48 << 20))


def pallas_conv_stack(X, Y, Hv, HTe, cp, *, nlayer, nhid):
    nv_p, hp = X.shape
    ne_p = Y.shape[0]
    kernel = functools.partial(_conv_stack_kernel, nlayer=nlayer, nhid=nhid)
    return pl.pallas_call(
        kernel,
        # No grid: every operand is a single fully VMEM-resident buffer
        # (no pipelining, hence no redundant double-buffering of resident data).
        out_shape=jax.ShapeDtypeStruct((nv_p, hp), jnp.float32),
        compiler_params=pltpu.CompilerParams(
            vmem_limit_bytes=_conv_vmem_limit(nv_p, ne_p, hp, nlayer)),
    )(X, Y, Hv, HTe,
      cp["tv_w"], cp["tv_b"], cp["te_w"], cp["te_b"],
      cp["em_wa"], cp["em_wb"], cp["em_b"],
      cp["vm_wa"], cp["vm_wb"], cp["vm_b"],
      cp["lnv_g"], cp["lnv_b"], cp["lne_g"], cp["lne_b"])


# ---------------------------------------------------------------------------
# Deterministic parameter init (PyTorch nn.Linear default: U(-1/sqrt(fan_in), ..))
# ---------------------------------------------------------------------------

def init_linear(key, fan_in, fan_out):
    k1, k2 = jax.random.split(key)
    bound = 1.0 / math.sqrt(fan_in)
    w = jax.random.uniform(k1, (fan_in, fan_out), jnp.float32, -bound, bound)
    b = jax.random.uniform(k2, (1, fan_out), jnp.float32, -bound, bound)
    return {"w": w, "b": b}


def init_layernorm(dim):
    return {"g": jnp.ones((1, dim), jnp.float32),
            "b": jnp.zeros((1, dim), jnp.float32)}


def init_params(key, nfeat, nedge, nhid, nout, nlayer):
    keys = jax.random.split(key, 8 + 6 * nlayer)
    ki = iter(range(len(keys)))
    params = {
        "vertex_input": {
            "ln": init_layernorm(nfeat),
            "l1": init_linear(keys[next(ki)], nfeat, nhid),
            "l2": init_linear(keys[next(ki)], nhid, nhid),
        },
        "edge_input": {
            "ln": init_layernorm(nedge),
            "l1": init_linear(keys[next(ki)], nedge, nhid),
            "l2": init_linear(keys[next(ki)], nhid, nhid),
        },
        "vertex_out": {
            "ln": init_layernorm(nhid),
            "l1": init_linear(keys[next(ki)], nhid, nhid),
            "l2": init_linear(keys[next(ki)], nhid, nout),
        },
        "convs": [],
    }
    for _ in range(nlayer):
        params["convs"].append({
            "theta_vertex": init_linear(keys[next(ki)], nhid, nhid),
            "theta_edge":   init_linear(keys[next(ki)], nhid, nhid),
            "edge_merge":   init_linear(keys[next(ki)], 2 * nhid, nhid),
            "vertex_merge": init_linear(keys[next(ki)], 2 * nhid, nhid),
            "layer_norm_v": init_layernorm(nhid),
            "layer_norm_e": init_layernorm(nhid),
        })
    return params


# ---------------------------------------------------------------------------
# Pack params: zero-pad features to 128 lanes (output head only to 8 lanes),
# split merge weights (no concat), stack per-layer conv weights.  All weights
# stay f32 (tiny; avoids unsupported bf16 dots).
# ---------------------------------------------------------------------------

def pack_params(params, nfeat, nedge, nhid, nout):
    FP = _round_up(nfeat, 128)
    EP = _round_up(nedge, 128)
    HP = _round_up(nhid, 128)
    OP = _round_up(nout, 8)   # narrow output head: 16x less final writeback

    def pack_mlp(blk, dinp, dhidp, doutp):
        return {
            "ln_g": _pad2(blk["ln"]["g"], 1, dinp),
            "ln_b": _pad2(blk["ln"]["b"], 1, dinp),
            "w1": _pad2(blk["l1"]["w"], dinp, dhidp),
            "b1": _pad2(blk["l1"]["b"], 1, dhidp),
            "w2": _pad2(blk["l2"]["w"], dhidp, doutp),
            "b2": _pad2(blk["l2"]["b"], 1, doutp),
        }

    convs = params["convs"]

    def stack_w(get):
        return jnp.stack([_pad2(get(c), HP, HP) for c in convs])

    def stack_v(get):
        return jnp.stack([_pad2(get(c), 1, HP) for c in convs])

    packed_convs = {
        "tv_w": stack_w(lambda c: c["theta_vertex"]["w"]),
        "tv_b": stack_v(lambda c: c["theta_vertex"]["b"]),
        "te_w": stack_w(lambda c: c["theta_edge"]["w"]),
        "te_b": stack_v(lambda c: c["theta_edge"]["b"]),
        "em_wa": stack_w(lambda c: c["edge_merge"]["w"][:nhid]),    # acts on Y0
        "em_wb": stack_w(lambda c: c["edge_merge"]["w"][nhid:]),    # acts on v2e
        "em_b":  stack_v(lambda c: c["edge_merge"]["b"]),
        "vm_wa": stack_w(lambda c: c["vertex_merge"]["w"][:nhid]),  # acts on X0
        "vm_wb": stack_w(lambda c: c["vertex_merge"]["w"][nhid:]),  # acts on e2v
        "vm_b":  stack_v(lambda c: c["vertex_merge"]["b"]),
        "lnv_g": stack_v(lambda c: c["layer_norm_v"]["g"]),
        "lnv_b": stack_v(lambda c: c["layer_norm_v"]["b"]),
        "lne_g": stack_v(lambda c: c["layer_norm_e"]["g"]),
        "lne_b": stack_v(lambda c: c["layer_norm_e"]["b"]),
    }
    return {
        "vertex_input": pack_mlp(params["vertex_input"], FP, HP, HP),
        "edge_input": pack_mlp(params["edge_input"], EP, HP, HP),
        "vertex_out": pack_mlp(params["vertex_out"], HP, HP, OP),
        "convs": packed_convs,
    }


# ---------------------------------------------------------------------------
# Model forward (padding / degree pre-scaling in JAX; compute in 4 Pallas calls)
# ---------------------------------------------------------------------------

def hypergraph_model_forward(pp, X, Y, H, *, nhid, nout, nlayer):
    nv, nfeat = X.shape
    ne, nedge = Y.shape
    FP = pp["vertex_input"]["ln_g"].shape[1]
    EP = pp["edge_input"]["ln_g"].shape[1]

    tr_v = _row_tile(nv)
    tr_e = _row_tile(ne)
    nv_p = _round_up(nv, tr_v)
    ne_p = _round_up(ne, tr_e)

    Xp = jnp.pad(X.astype(jnp.float32), ((0, nv_p - nv), (0, FP - nfeat)))
    Yp = jnp.pad(Y.astype(jnp.float32), ((0, ne_p - ne), (0, EP - nedge)))

    # Fold mean-aggregation degree normalization into H once per forward;
    # store the (largest) incidence operands as bf16 to halve their HBM traffic.
    Hf = H.astype(jnp.float32)
    inv_deg_v = 1.0 / jnp.maximum(jnp.sum(Hf, axis=1, keepdims=True), 1.0)  # [nv,1]
    inv_deg_e = 1.0 / jnp.maximum(jnp.sum(Hf, axis=0, keepdims=True), 1.0)  # [1,ne]
    Hv = jnp.pad(Hf * inv_deg_v,
                 ((0, nv_p - nv), (0, ne_p - ne))).astype(jnp.bfloat16)      # [nv_p,ne_p]
    HTe = jnp.pad(Hf.T * inv_deg_e.T,
                  ((0, ne_p - ne), (0, nv_p - nv))).astype(jnp.bfloat16)     # [ne_p,nv_p]

    # vertex_input / edge_input: fused LN -> Linear -> ReLU -> Linear
    Xh = pallas_mlp(Xp, pp["vertex_input"], d_in=nfeat, act_out="none", row_tile=tr_v)
    Yh = pallas_mlp(Yp, pp["edge_input"], d_in=nedge, act_out="none", row_tile=tr_e)

    # whole conv stack in one kernel (X, Y, H, weights VMEM-resident)
    Xc = pallas_conv_stack(Xh, Yh, Hv, HTe, pp["convs"], nlayer=nlayer, nhid=nhid)

    # post-stack act(X) is a no-op: last conv LayerNorm output is already ReLU'd
    # (ReLU is idempotent).

    # vertex_out: fused LN -> Linear -> ReLU -> Linear -> sigmoid (8-lane output)
    out = pallas_mlp(Xc, pp["vertex_out"], d_in=nhid, act_out="sigmoid", row_tile=tr_v)

    return jnp.squeeze(out[:nv, :nout])  # [Nv, nout] -> [Nv] when nout == 1


# ---------------------------------------------------------------------------
# Main
# ---------------------------------------------------------------------------

if __name__ == "__main__":
    NUM_VERTICES = 16
    NUM_EDGES = 8
    NFEAT = 16     # vertex input feature dim (args.nfeat)
    NEDGE = 16     # edge input feature dim   (args.nedge)
    NHID = 32      # hidden dim               (args.nhid)
    NOUT = 1       # output dim               (args.nout)
    NLAYER = 2     # args.nlayer

    key = jax.random.PRNGKey(0)
    k_params, k_x, k_y = jax.random.split(key, 3)

    params = init_params(k_params, NFEAT, NEDGE, NHID, NOUT, NLAYER)
    packed = pack_params(params, NFEAT, NEDGE, NHID, NOUT)

    # G.X: vertex features, G.Y: hyperedge features
    X = jax.random.normal(k_x, (NUM_VERTICES, NFEAT), jnp.float32)
    Y = jax.random.normal(k_y, (NUM_EDGES, NEDGE), jnp.float32)

    # Deterministic dense incidence matrix: vertex v belongs to edges
    # (v % NUM_EDGES) and ((v + 1) % NUM_EDGES) -> every edge/vertex non-empty.
    v_idx = jnp.arange(NUM_VERTICES)[:, None]
    e_idx = jnp.arange(NUM_EDGES)[None, :]
    H = ((v_idx % NUM_EDGES == e_idx) | ((v_idx + 1) % NUM_EDGES == e_idx))
    H = H.astype(jnp.float32)

    fwd = jax.jit(functools.partial(hypergraph_model_forward,
                                    nhid=NHID, nout=NOUT, nlayer=NLAYER))
    out = fwd(packed, X, Y, H)
    out = jax.block_until_ready(out)

    assert out.shape == (NUM_VERTICES,)
    assert bool(jnp.all(jnp.isfinite(out)))
    assert bool(jnp.all((out >= 0.0) & (out <= 1.0)))  # sigmoid output
    print("KERNEL_OK")
</pallas_src>

<mosaic_0001>
module attributes {stable_mosaic.version = 11 : i64} {
  func.func @_mlp_kernel(%arg0: i32, %arg1: memref<8x128xf32, #tpu.memory_space<vmem>>, %arg2: memref<1x128xf32, #tpu.memory_space<vmem>>, %arg3: memref<1x128xf32, #tpu.memory_space<vmem>>, %arg4: memref<128x128xf32, #tpu.memory_space<vmem>>, %arg5: memref<1x128xf32, #tpu.memory_space<vmem>>, %arg6: memref<128x128xf32, #tpu.memory_space<vmem>>, %arg7: memref<1x128xf32, #tpu.memory_space<vmem>>, %arg8: memref<8x128xf32, #tpu.memory_space<vmem>>) attributes {dimension_semantics = [#tpu.dimension_semantics<parallel>], iteration_bounds = array<i64: 1>, scalar_prefetch = 0 : i64, scratch_operands = 0 : i64, tpu.core_type = #tpu.core_type<tc>, window_params = [{transform_indices = @transform_0, window_bounds = array<i64: 8, 128>}, {pipeline_mode = #tpu.pipeline_mode<synchronous>, transform_indices = @transform_1, window_bounds = array<i64: 1, 128>}, {pipeline_mode = #tpu.pipeline_mode<synchronous>, transform_indices = @transform_2, window_bounds = array<i64: 1, 128>}, {pipeline_mode = #tpu.pipeline_mode<synchronous>, transform_indices = @transform_3, window_bounds = array<i64: 128, 128>}, {pipeline_mode = #tpu.pipeline_mode<synchronous>, transform_indices = @transform_4, window_bounds = array<i64: 1, 128>}, {pipeline_mode = #tpu.pipeline_mode<synchronous>, transform_indices = @transform_5, window_bounds = array<i64: 128, 128>}, {pipeline_mode = #tpu.pipeline_mode<synchronous>, transform_indices = @transform_6, window_bounds = array<i64: 1, 128>}, {transform_indices = @transform_7, window_bounds = array<i64: 8, 128>}]} {
    %c0 = arith.constant 0 : index
    %c0_0 = arith.constant 0 : index
    %0 = vector.load %arg1[%c0, %c0_0] : memref<8x128xf32, #tpu.memory_space<vmem>>, vector<8x128xf32>
    %c0_1 = arith.constant 0 : index
    %c0_2 = arith.constant 0 : index
    %1 = vector.load %arg2[%c0_1, %c0_2] : memref<1x128xf32, #tpu.memory_space<vmem>>, vector<1x128xf32>
    %c0_3 = arith.constant 0 : index
    %c0_4 = arith.constant 0 : index
    %2 = vector.load %arg3[%c0_3, %c0_4] : memref<1x128xf32, #tpu.memory_space<vmem>>, vector<1x128xf32>
    %cst = arith.constant dense<0.000000e+00> : vector<8xf32>
    %3 = vector.multi_reduction <add>, %0, %cst [1] : vector<8x128xf32> to vector<8xf32>
    %4 = vector.shape_cast %3 : vector<8xf32> to vector<8x1xf32>
    %cst_5 = arith.constant 6.250000e-02 : f32
    %5 = vector.broadcast %cst_5 : f32 to vector<8x1xf32>
    %6 = arith.mulf %4, %5 : vector<8x1xf32>
    %7 = arith.mulf %0, %0 : vector<8x128xf32>
    %cst_6 = arith.constant dense<0.000000e+00> : vector<8xf32>
    %8 = vector.multi_reduction <add>, %7, %cst_6 [1] : vector<8x128xf32> to vector<8xf32>
    %9 = vector.shape_cast %8 : vector<8xf32> to vector<8x1xf32>
    %cst_7 = arith.constant 6.250000e-02 : f32
    %10 = vector.broadcast %cst_7 : f32 to vector<8x1xf32>
    %11 = arith.mulf %9, %10 : vector<8x1xf32>
    %12 = arith.mulf %6, %6 : vector<8x1xf32>
    %13 = arith.subf %11, %12 : vector<8x1xf32>
    %cst_8 = arith.constant 0.000000e+00 : f32
    %14 = vector.broadcast %cst_8 : f32 to vector<8x1xf32>
    %15 = arith.maximumf %13, %14 : vector<8x1xf32>
    %16 = vector.broadcast %6 : vector<8x1xf32> to vector<8x128xf32>
    %17 = arith.subf %0, %16 : vector<8x128xf32>
    %cst_9 = arith.constant 9.99999974E-6 : f32
    %18 = vector.broadcast %cst_9 : f32 to vector<8x1xf32>
    %19 = arith.addf %15, %18 : vector<8x1xf32>
    %20 = math.rsqrt %19 : vector<8x1xf32>
    %21 = vector.broadcast %20 : vector<8x1xf32> to vector<8x128xf32>
    %22 = arith.mulf %17, %21 : vector<8x128xf32>
    %23 = vector.broadcast %1 : vector<1x128xf32> to vector<8x128xf32>
    %24 = arith.mulf %22, %23 : vector<8x128xf32>
    %25 = vector.broadcast %2 : vector<1x128xf32> to vector<8x128xf32>
    %26 = arith.addf %24, %25 : vector<8x128xf32>
    %c0_10 = arith.constant 0 : index
    %c0_11 = arith.constant 0 : index
    %27 = vector.load %arg4[%c0_10, %c0_11] : memref<128x128xf32, #tpu.memory_space<vmem>>, vector<128x128xf32>
    %cst_12 = arith.constant dense<0.000000e+00> : vector<8x128xf32>
    %28 = tpu.matmul %26, %27, %cst_12 {dimension_numbers = #tpu.dot_dimension_numbers<[1], [0], [0], [1], [0, 0, 1, 1], [], []>} : vector<8x128xf32>, vector<128x128xf32>, vector<8x128xf32> -> vector<8x128xf32>
    %c0_13 = arith.constant 0 : index
    %c0_14 = arith.constant 0 : index
    %29 = vector.load %arg5[%c0_13, %c0_14] : memref<1x128xf32, #tpu.memory_space<vmem>>, vector<1x128xf32>
    %30 = vector.broadcast %29 : vector<1x128xf32> to vector<8x128xf32>
    %31 = arith.addf %28, %30 : vector<8x128xf32>
    %cst_15 = arith.constant 0.000000e+00 : f32
    %32 = vector.broadcast %cst_15 : f32 to vector<8x128xf32>
    %33 = arith.maximumf %31, %32 : vector<8x128xf32>
    %c0_16 = arith.constant 0 : index
    %c0_17 = arith.constant 0 : index
    %34 = vector.load %arg6[%c0_16, %c0_17] : memref<128x128xf32, #tpu.memory_space<vmem>>, vector<128x128xf32>
    %cst_18 = arith.constant dense<0.000000e+00> : vector<8x128xf32>
    %35 = tpu.matmul %33, %34, %cst_18 {dimension_numbers = #tpu.dot_dimension_numbers<[1], [0], [0], [1], [0, 0, 1, 1], [], []>} : vector<8x128xf32>, vector<128x128xf32>, vector<8x128xf32> -> vector<8x128xf32>
    %c0_19 = arith.constant 0 : index
    %c0_20 = arith.constant 0 : index
    %36 = vector.load %arg7[%c0_19, %c0_20] : memref<1x128xf32, #tpu.memory_space<vmem>>, vector<1x128xf32>
    %37 = vector.broadcast %36 : vector<1x128xf32> to vector<8x128xf32>
    %38 = arith.addf %35, %37 : vector<8x128xf32>
    %c0_21 = arith.constant 0 : index
    %c0_22 = arith.constant 0 : index
    %39 = vector.load %arg8[%c0_21, %c0_22] : memref<8x128xf32, #tpu.memory_space<vmem>>, vector<8x128xf32>
    tpu.vector_store %arg8[%c0_21, %c0_22], %38 {strides = array<i32>} : memref<8x128xf32, #tpu.memory_space<vmem>>, vector<8x128xf32>,
    return
  }
  func.func @transform_0(%arg0: i32) -> (i32, i32) {
    %c0_i32 = arith.constant 0 : i32
    %c0_i32_0 = arith.constant 0 : i32
    return %arg0, %c0_i32 : i32, i32
  }
  func.func @transform_1(%arg0: i32) -> (i32, i32) {
    %c0_i32 = arith.constant 0 : i32
    %c0_i32_0 = arith.constant 0 : i32
    %c0_i32_1 = arith.constant 0 : i32
    return %c0_i32, %c0_i32_0 : i32, i32
  }
  func.func @transform_2(%arg0: i32) -> (i32, i32) {
    %c0_i32 = arith.constant 0 : i32
    %c0_i32_0 = arith.constant 0 : i32
    %c0_i32_1 = arith.constant 0 : i32
    return %c0_i32, %c0_i32_0 : i32, i32
  }
  func.func @transform_3(%arg0: i32) -> (i32, i32) {
    %c0_i32 = arith.constant 0 : i32
    %c0_i32_0 = arith.constant 0 : i32
    %c0_i32_1 = arith.constant 0 : i32
    return %c0_i32, %c0_i32_0 : i32, i32
  }
  func.func @transform_4(%arg0: i32) -> (i32, i32) {
    %c0_i32 = arith.constant 0 : i32
    %c0_i32_0 = arith.constant 0 : i32
    %c0_i32_1 = arith.constant 0 : i32
    return %c0_i32, %c0_i32_0 : i32, i32
  }
  func.func @transform_5(%arg0: i32) -> (i32, i32) {
    %c0_i32 = arith.constant 0 : i32
    %c0_i32_0 = arith.constant 0 : i32
    %c0_i32_1 = arith.constant 0 : i32
    return %c0_i32, %c0_i32_0 : i32, i32
  }
  func.func @transform_6(%arg0: i32) -> (i32, i32) {
    %c0_i32 = arith.constant 0 : i32
    %c0_i32_0 = arith.constant 0 : i32
    %c0_i32_1 = arith.constant 0 : i32
    return %c0_i32, %c0_i32_0 : i32, i32
  }
  func.func @transform_7(%arg0: i32) -> (i32, i32) {
    %c0_i32 = arith.constant 0 : i32
    %c0_i32_0 = arith.constant 0 : i32
    return %arg0, %c0_i32 : i32, i32
  }
}

module attributes {stable_mosaic.version = 11 : i64} {
  func.func @_conv_stack_kernel(%arg0: memref<16x128xf32, #tpu.memory_space<vmem>>, %arg1: memref<8x128xf32, #tpu.memory_space<vmem>>, %arg2: memref<16x8xbf16, #tpu.memory_space<vmem>>, %arg3: memref<8x16xbf16, #tpu.memory_space<vmem>>, %arg4: memref<2x128x128xf32, #tpu.memory_space<vmem>>, %arg5: memref<2x1x128xf32, #tpu.memory_space<vmem>>, %arg6: memref<2x128x128xf32, #tpu.memory_space<vmem>>, %arg7: memref<2x1x128xf32, #tpu.memory_space<vmem>>, %arg8: memref<2x128x128xf32, #tpu.memory_space<vmem>>, %arg9: memref<2x128x128xf32, #tpu.memory_space<vmem>>, %arg10: memref<2x1x128xf32, #tpu.memory_space<vmem>>, %arg11: memref<2x128x128xf32, #tpu.memory_space<vmem>>, %arg12: memref<2x128x128xf32, #tpu.memory_space<vmem>>, %arg13: memref<2x1x128xf32, #tpu.memory_space<vmem>>, %arg14: memref<2x1x128xf32, #tpu.memory_space<vmem>>, %arg15: memref<2x1x128xf32, #tpu.memory_space<vmem>>, %arg16: memref<2x1x128xf32, #tpu.memory_space<vmem>>, %arg17: memref<2x1x128xf32, #tpu.memory_space<vmem>>, %arg18: memref<16x128xf32, #tpu.memory_space<vmem>>) attributes {dimension_semantics = [], scalar_prefetch = 0 : i64, scratch_operands = 0 : i64, tpu.core_type = #tpu.core_type<tc>} {
    %c0 = arith.constant 0 : index
    %c0_0 = arith.constant 0 : index
    %0 = vector.load %arg0[%c0, %c0_0] : memref<16x128xf32, #tpu.memory_space<vmem>>, vector<16x128xf32>
    %c0_1 = arith.constant 0 : index
    %c0_2 = arith.constant 0 : index
    %1 = vector.load %arg1[%c0_1, %c0_2] : memref<8x128xf32, #tpu.memory_space<vmem>>, vector<8x128xf32>
    %c0_3 = arith.constant 0 : index
    %c0_4 = arith.constant 0 : index
    %2 = vector.load %arg2[%c0_3, %c0_4] : memref<16x8xbf16, #tpu.memory_space<vmem>>, vector<16x8xbf16>
    %3 = arith.extf %2 : vector<16x8xbf16> to vector<16x8xf32>
    %c0_5 = arith.constant 0 : index
    %c0_6 = arith.constant 0 : index
    %4 = vector.load %arg3[%c0_5, %c0_6] : memref<8x16xbf16, #tpu.memory_space<vmem>>, vector<8x16xbf16>
    %5 = arith.extf %4 : vector<8x16xbf16> to vector<8x16xf32>
    %c0_7 = arith.constant 0 : index
    %c0_8 = arith.constant 0 : index
    %c0_9 = arith.constant 0 : index
    %6 = vector.load %arg4[%c0_7, %c0_8, %c0_9] : memref<2x128x128xf32, #tpu.memory_space<vmem>>, vector<1x128x128xf32>
    %7 = vector.shape_cast %6 : vector<1x128x128xf32> to vector<128x128xf32>
    %cst = arith.constant dense<0.000000e+00> : vector<16x128xf32>
    %8 = tpu.matmul %0, %7, %cst {dimension_numbers = #tpu.dot_dimension_numbers<[1], [0], [0], [1], [0, 0, 1, 1], [], []>} : vector<16x128xf32>, vector<128x128xf32>, vector<16x128xf32> -> vector<16x128xf32>
    %c0_10 = arith.constant 0 : index
    %c0_11 = arith.constant 0 : index
    %c0_12 = arith.constant 0 : index
    %9 = vector.load %arg5[%c0_10, %c0_11, %c0_12] : memref<2x1x128xf32, #tpu.memory_space<vmem>>, vector<1x1x128xf32>
    %10 = vector.shape_cast %9 : vector<1x1x128xf32> to vector<1x128xf32>
    %11 = vector.broadcast %10 : vector<1x128xf32> to vector<16x128xf32>
    %12 = arith.addf %8, %11 : vector<16x128xf32>
    %cst_13 = arith.constant dense<0.000000e+00> : vector<8x128xf32>
    %13 = tpu.matmul %5, %12, %cst_13 {dimension_numbers = #tpu.dot_dimension_numbers<[1], [0], [0], [1], [0, 0, 1, 1], [], []>} : vector<8x16xf32>, vector<16x128xf32>, vector<8x128xf32> -> vector<8x128xf32>
    %c0_14 = arith.constant 0 : index
    %c0_15 = arith.constant 0 : index
    %c0_16 = arith.constant 0 : index
    %14 = vector.load %arg8[%c0_14, %c0_15, %c0_16] : memref<2x128x128xf32, #tpu.memory_space<vmem>>, vector<1x128x128xf32>
    %15 = vector.shape_cast %14 : vector<1x128x128xf32> to vector<128x128xf32>
    %cst_17 = arith.constant dense<0.000000e+00> : vector<8x128xf32>
    %16 = tpu.matmul %1, %15, %cst_17 {dimension_numbers = #tpu.dot_dimension_numbers<[1], [0], [0], [1], [0, 0, 1, 1], [], []>} : vector<8x128xf32>, vector<128x128xf32>, vector<8x128xf32> -> vector<8x128xf32>
    %c0_18 = arith.constant 0 : index
    %c0_19 = arith.constant 0 : index
    %c0_20 = arith.constant 0 : index
    %17 = vector.load %arg9[%c0_18, %c0_19, %c0_20] : memref<2x128x128xf32, #tpu.memory_space<vmem>>, vector<1x128x128xf32>
    %18 = vector.shape_cast %17 : vector<1x128x128xf32> to vector<128x128xf32>
    %cst_21 = arith.constant dense<0.000000e+00> : vector<8x128xf32>
    %19 = tpu.matmul %13, %18, %cst_21 {dimension_numbers = #tpu.dot_dimension_numbers<[1], [0], [0], [1], [0, 0, 1, 1], [], []>} : vector<8x128xf32>, vector<128x128xf32>, vector<8x128xf32> -> vector<8x128xf32>
    %20 = arith.addf %16, %19 : vector<8x128xf32>
    %c0_22 = arith.constant 0 : index
    %c0_23 = arith.constant 0 : index
    %c0_24 = arith.constant 0 : index
    %21 = vector.load %arg10[%c0_22, %c0_23, %c0_24] : memref<2x1x128xf32, #tpu.memory_space<vmem>>, vector<1x1x128xf32>
    %22 = vector.shape_cast %21 : vector<1x1x128xf32> to vector<1x128xf32>
    %23 = vector.broadcast %22 : vector<1x128xf32> to vector<8x128xf32>
    %24 = arith.addf %20, %23 : vector<8x128xf32>
    %c0_25 = arith.constant 0 : index
    %c0_26 = arith.constant 0 : index
    %c0_27 = arith.constant 0 : index
    %25 = vector.load %arg6[%c0_25, %c0_26, %c0_27] : memref<2x128x128xf32, #tpu.memory_space<vmem>>, vector<1x128x128xf32>
    %26 = vector.shape_cast %25 : vector<1x128x128xf32> to vector<128x128xf32>
    %cst_28 = arith.constant dense<0.000000e+00> : vector<8x128xf32>
    %27 = tpu.matmul %24, %26, %cst_28 {dimension_numbers = #tpu.dot_dimension_numbers<[1], [0], [0], [1], [0, 0, 1, 1], [], []>} : vector<8x128xf32>, vector<128x128xf32>, vector<8x128xf32> -> vector<8x128xf32>
    %c0_29 = arith.constant 0 : index
    %c0_30 = arith.constant 0 : index
    %c0_31 = arith.constant 0 : index
    %28 = vector.load %arg7[%c0_29, %c0_30, %c0_31] : memref<2x1x128xf32, #tpu.memory_space<vmem>>, vector<1x1x128xf32>
    %29 = vector.shape_cast %28 : vector<1x1x128xf32> to vector<1x128xf32>
    %30 = vector.broadcast %29 : vector<1x128xf32> to vector<8x128xf32>
    %31 = arith.addf %27, %30 : vector<8x128xf32>
    %cst_32 = arith.constant dense<0.000000e+00> : vector<16x128xf32>
    %32 = tpu.matmul %3, %31, %cst_32 {dimension_numbers = #tpu.dot_dimension_numbers<[1], [0], [0], [1], [0, 0, 1, 1], [], []>} : vector<16x8xf32>, vector<8x128xf32>, vector<16x128xf32> -> vector<16x128xf32>
    %c0_33 = arith.constant 0 : index
    %c0_34 = arith.constant 0 : index
    %c0_35 = arith.constant 0 : index
    %33 = vector.load %arg11[%c0_33, %c0_34, %c0_35] : memref<2x128x128xf32, #tpu.memory_space<vmem>>, vector<1x128x128xf32>
    %34 = vector.shape_cast %33 : vector<1x128x128xf32> to vector<128x128xf32>
    %cst_36 = arith.constant dense<0.000000e+00> : vector<16x128xf32>
    %35 = tpu.matmul %0, %34, %cst_36 {dimension_numbers = #tpu.dot_dimension_numbers<[1], [0], [0], [1], [0, 0, 1, 1], [], []>} : vector<16x128xf32>, vector<128x128xf32>, vector<16x128xf32> -> vector<16x128xf32>
    %c0_37 = arith.constant 0 : index
    %c0_38 = arith.constant 0 : index
    %c0_39 = arith.constant 0 : index
    %36 = vector.load %arg12[%c0_37, %c0_38, %c0_39] : memref<2x128x128xf32, #tpu.memory_space<vmem>>, vector<1x128x128xf32>
    %37 = vector.shape_cast %36 : vector<1x128x128xf32> to vector<128x128xf32>
    %cst_40 = arith.constant dense<0.000000e+00> : vector<16x128xf32>
    %38 = tpu.matmul %32, %37, %cst_40 {dimension_numbers = #tpu.dot_dimension_numbers<[1], [0], [0], [1], [0, 0, 1, 1], [], []>} : vector<16x128xf32>, vector<128x128xf32>, vector<16x128xf32> -> vector<16x128xf32>
    %39 = arith.addf %35, %38 : vector<16x128xf32>
    %c0_41 = arith.constant 0 : index
    %c0_42 = arith.constant 0 : index
    %c0_43 = arith.constant 0 : index
    %40 = vector.load %arg13[%c0_41, %c0_42, %c0_43] : memref<2x1x128xf32, #tpu.memory_space<vmem>>, vector<1x1x128xf32>
    %41 = vector.shape_cast %40 : vector<1x1x128xf32> to vector<1x128xf32>
    %42 = vector.broadcast %41 : vector<1x128xf32> to vector<16x128xf32>
    %43 = arith.addf %39, %42 : vector<16x128xf32>
    %c0_44 = arith.constant 0 : index
    %c0_45 = arith.constant 0 : index
    %c0_46 = arith.constant 0 : index
    %44 = vector.load %arg14[%c0_44, %c0_45, %c0_46] : memref<2x1x128xf32, #tpu.memory_space<vmem>>, vector<1x1x128xf32>
    %45 = vector.shape_cast %44 : vector<1x1x128xf32> to vector<1x128xf32>
    %c0_47 = arith.constant 0 : index
    %c0_48 = arith.constant 0 : index
    %c0_49 = arith.constant 0 : index
    %46 = vector.load %arg15[%c0_47, %c0_48, %c0_49] : memref<2x1x128xf32, #tpu.memory_space<vmem>>, vector<1x1x128xf32>
    %47 = vector.shape_cast %46 : vector<1x1x128xf32> to vector<1x128xf32>
    %cst_50 = arith.constant dense<0.000000e+00> : vector<16xf32>
    %48 = vector.multi_reduction <add>, %43, %cst_50 [1] : vector<16x128xf32> to vector<16xf32>
    %49 = vector.shape_cast %48 : vector<16xf32> to vector<16x1xf32>
    %cst_51 = arith.constant 3.125000e-02 : f32
    %50 = vector.broadcast %cst_51 : f32 to vector<16x1xf32>
    %51 = arith.mulf %49, %50 : vector<16x1xf32>
    %52 = arith.mulf %43, %43 : vector<16x128xf32>
    %cst_52 = arith.constant dense<0.000000e+00> : vector<16xf32>
    %53 = vector.multi_reduction <add>, %52, %cst_52 [1] : vector<16x128xf32> to vector<16xf32>
    %54 = vector.shape_cast %53 : vector<16xf32> to vector<16x1xf32>
    %cst_53 = arith.constant 3.125000e-02 : f32
    %55 = vector.broadcast %cst_53 : f32 to vector<16x1xf32>
    %56 = arith.mulf %54, %55 : vector<16x1xf32>
    %57 = arith.mulf %51, %51 : vector<16x1xf32>
    %58 = arith.subf %56, %57 : vector<16x1xf32>
    %cst_54 = arith.constant 0.000000e+00 : f32
    %59 = vector.broadcast %cst_54 : f32 to vector<16x1xf32>
    %60 = arith.maximumf %58, %59 : vector<16x1xf32>
    %61 = vector.broadcast %51 : vector<16x1xf32> to vector<16x128xf32>
    %62 = arith.subf %43, %61 : vector<16x128xf32>
    %cst_55 = arith.constant 9.99999974E-6 : f32
    %63 = vector.broadcast %cst_55 : f32 to vector<16x1xf32>
    %64 = arith.addf %60, %63 : vector<16x1xf32>
    %65 = math.rsqrt %64 : vector<16x1xf32>
    %66 = vector.broadcast %65 : vector<16x1xf32> to vector<16x128xf32>
    %67 = arith.mulf %62, %66 : vector<16x128xf32>
    %68 = vector.broadcast %45 : vector<1x128xf32> to vector<16x128xf32>
    %69 = arith.mulf %67, %68 : vector<16x128xf32>
    %70 = vector.broadcast %47 : vector<1x128xf32> to vector<16x128xf32>
    %71 = arith.addf %69, %70 : vector<16x128xf32>
    %cst_56 = arith.constant 0.000000e+00 : f32
    %72 = vector.broadcast %cst_56 : f32 to vector<16x128xf32>
    %73 = arith.maximumf %71, %72 : vector<16x128xf32>
    %c0_57 = arith.constant 0 : index
    %c0_58 = arith.constant 0 : index
    %c0_59 = arith.constant 0 : index
    %74 = vector.load %arg16[%c0_57, %c0_58, %c0_59] : memref<2x1x128xf32, #tpu.memory_space<vmem>>, vector<1x1x128xf32>
    %75 = vector.shape_cast %74 : vector<1x1x128xf32> to vector<1x128xf32>
    %c0_60 = arith.constant 0 : index
    %c0_61 = arith.constant 0 : index
    %c0_62 = arith.constant 0 : index
    %76 = vector.load %arg17[%c0_60, %c0_61, %c0_62] : memref<2x1x128xf32, #tpu.memory_space<vmem>>, vector<1x1x128xf32>
    %77 = vector.shape_cast %76 : vector<1x1x128xf32> to vector<1x128xf32>
    %cst_63 = arith.constant dense<0.000000e+00> : vector<8xf32>
    %78 = vector.multi_reduction <add>, %31, %cst_63 [1] : vector<8x128xf32> to vector<8xf32>
    %79 = vector.shape_cast %78 : vector<8xf32> to vector<8x1xf32>
    %cst_64 = arith.constant 3.125000e-02 : f32
    %80 = vector.broadcast %cst_64 : f32 to vector<8x1xf32>
    %81 = arith.mulf %79, %80 : vector<8x1xf32>
    %82 = arith.mulf %31, %31 : vector<8x128xf32>
    %cst_65 = arith.constant dense<0.000000e+00> : vector<8xf32>
    %83 = vector.multi_reduction <add>, %82, %cst_65 [1] : vector<8x128xf32> to vector<8xf32>
    %84 = vector.shape_cast %83 : vector<8xf32> to vector<8x1xf32>
    %cst_66 = arith.constant 3.125000e-02 : f32
    %85 = vector.broadcast %cst_66 : f32 to vector<8x1xf32>
    %86 = arith.mulf %84, %85 : vector<8x1xf32>
    %87 = arith.mulf %81, %81 : vector<8x1xf32>
    %88 = arith.subf %86, %87 : vector<8x1xf32>
    %cst_67 = arith.constant 0.000000e+00 : f32
    %89 = vector.broadcast %cst_67 : f32 to vector<8x1xf32>
    %90 = arith.maximumf %88, %89 : vector<8x1xf32>
    %91 = vector.broadcast %81 : vector<8x1xf32> to vector<8x128xf32>
    %92 = arith.subf %31, %91 : vector<8x128xf32>
    %cst_68 = arith.constant 9.99999974E-6 : f32
    %93 = vector.broadcast %cst_68 : f32 to vector<8x1xf32>
    %94 = arith.addf %90, %93 : vector<8x1xf32>
    %95 = math.rsqrt %94 : vector<8x1xf32>
    %96 = vector.broadcast %95 : vector<8x1xf32> to vector<8x128xf32>
    %97 = arith.mulf %92, %96 : vector<8x128xf32>
    %98 = vector.broadcast %75 : vector<1x128xf32> to vector<8x128xf32>
    %99 = arith.mulf %97, %98 : vector<8x128xf32>
    %100 = vector.broadcast %77 : vector<1x128xf32> to vector<8x128xf32>
    %101 = arith.addf %99, %100 : vector<8x128xf32>
    %cst_69 = arith.constant 0.000000e+00 : f32
    %102 = vector.broadcast %cst_69 : f32 to vector<8x128xf32>
    %103 = arith.maximumf %101, %102 : vector<8x128xf32>
    %c1 = arith.constant 1 : index
    %c0_70 = arith.constant 0 : index
    %c0_71 = arith.constant 0 : index
    %104 = vector.load %arg4[%c1, %c0_70, %c0_71] : memref<2x128x128xf32, #tpu.memory_space<vmem>>, vector<1x128x128xf32>
    %105 = vector.shape_cast %104 : vector<1x128x128xf32> to vector<128x128xf32>
    %cst_72 = arith.constant dense<0.000000e+00> : vector<16x128xf32>
    %106 = tpu.matmul %73, %105, %cst_72 {dimension_numbers = #tpu.dot_dimension_numbers<[1], [0], [0], [1], [0, 0, 1, 1], [], []>} : vector<16x128xf32>, vector<128x128xf32>, vector<16x128xf32> -> vector<16x128xf32>
    %c1_73 = arith.constant 1 : index
    %c0_74 = arith.constant 0 : index
    %c0_75 = arith.constant 0 : index
    %107 = vector.load %arg5[%c1_73, %c0_74, %c0_75] : memref<2x1x128xf32, #tpu.memory_space<vmem>>, vector<1x1x128xf32>
    %108 = vector.shape_cast %107 : vector<1x1x128xf32> to vector<1x128xf32>
    %109 = vector.broadcast %108 : vector<1x128xf32> to vector<16x128xf32>
    %110 = arith.addf %106, %109 : vector<16x128xf32>
    %cst_76 = arith.constant dense<0.000000e+00> : vector<8x128xf32>
    %111 = tpu.matmul %5, %110, %cst_76 {dimension_numbers = #tpu.dot_dimension_numbers<[1], [0], [0], [1], [0, 0, 1, 1], [], []>} : vector<8x16xf32>, vector<16x128xf32>, vector<8x128xf32> -> vector<8x128xf32>
    %c1_77 = arith.constant 1 : index
    %c0_78 = arith.constant 0 : index
    %c0_79 = arith.constant 0 : index
    %112 = vector.load %arg8[%c1_77, %c0_78, %c0_79] : memref<2x128x128xf32, #tpu.memory_space<vmem>>, vector<1x128x128xf32>
    %113 = vector.shape_cast %112 : vector<1x128x128xf32> to vector<128x128xf32>
    %cst_80 = arith.constant dense<0.000000e+00> : vector<8x128xf32>
    %114 = tpu.matmul %103, %113, %cst_80 {dimension_numbers = #tpu.dot_dimension_numbers<[1], [0], [0], [1], [0, 0, 1, 1], [], []>} : vector<8x128xf32>, vector<128x128xf32>, vector<8x128xf32> -> vector<8x128xf32>
    %c1_81 = arith.constant 1 : index
    %c0_82 = arith.constant 0 : index
    %c0_83 = arith.constant 0 : index
    %115 = vector.load %arg9[%c1_81, %c0_82, %c0_83] : memref<2x128x128xf32, #tpu.memory_space<vmem>>, vector<1x128x128xf32>
    %116 = vector.shape_cast %115 : vector<1x128x128xf32> to vector<128x128xf32>
    %cst_84 = arith.constant dense<0.000000e+00> : vector<8x128xf32>
    %117 = tpu.matmul %111, %116, %cst_84 {dimension_numbers = #tpu.dot_dimension_numbers<[1], [0], [0], [1], [0, 0, 1, 1], [], []>} : vector<8x128xf32>, vector<128x128xf32>, vector<8x128xf32> -> vector<8x128xf32>
    %118 = arith.addf %114, %117 : vector<8x128xf32>
    %c1_85 = arith.constant 1 : index
    %c0_86 = arith.constant 0 : index
    %c0_87 = arith.constant 0 : index
    %119 = vector.load %arg10[%c1_85, %c0_86, %c0_87] : memref<2x1x128xf32, #tpu.memory_space<vmem>>, vector<1x1x128xf32>
    %120 = vector.shape_cast %119 : vector<1x1x128xf32> to vector<1x128xf32>
    %121 = vector.broadcast %120 : vector<1x128xf32> to vector<8x128xf32>
    %122 = arith.addf %118, %121 : vector<8x128xf32>
    %c1_88 = arith.constant 1 : index
    %c0_89 = arith.constant 0 : index
    %c0_90 = arith.constant 0 : index
    %123 = vector.load %arg6[%c1_88, %c0_89, %c0_90] : memref<2x128x128xf32, #tpu.memory_space<vmem>>, vector<1x128x128xf32>
    %124 = vector.shape_cast %123 : vector<1x128x128xf32> to vector<128x128xf32>
    %cst_91 = arith.constant dense<0.000000e+00> : vector<8x128xf32>
    %125 = tpu.matmul %122, %124, %cst_91 {dimension_numbers = #tpu.dot_dimension_numbers<[1], [0], [0], [1], [0, 0, 1, 1], [], []>} : vector<8x128xf32>, vector<128x128xf32>, vector<8x128xf32> -> vector<8x128xf32>
    %c1_92 = arith.constant 1 : index
    %c0_93 = arith.constant 0 : index
    %c0_94 = arith.constant 0 : index
    %126 = vector.load %arg7[%c1_92, %c0_93, %c0_94] : memref<2x1x128xf32, #tpu.memory_space<vmem>>, vector<1x1x128xf32>
    %127 = vector.shape_cast %126 : vector<1x1x128xf32> to vector<1x128xf32>
    %128 = vector.broadcast %127 : vector<1x128xf32> to vector<8x128xf32>
    %129 = arith.addf %125, %128 : vector<8x128xf32>
    %cst_95 = arith.constant dense<0.000000e+00> : vector<16x128xf32>
    %130 = tpu.matmul %3, %129, %cst_95 {dimension_numbers = #tpu.dot_dimension_numbers<[1], [0], [0], [1], [0, 0, 1, 1], [], []>} : vector<16x8xf32>, vector<8x128xf32>, vector<16x128xf32> -> vector<16x128xf32>
    %c1_96 = arith.constant 1 : index
    %c0_97 = arith.constant 0 : index
    %c0_98 = arith.constant 0 : index
    %131 = vector.load %arg11[%c1_96, %c0_97, %c0_98] : memref<2x128x128xf32, #tpu.memory_space<vmem>>, vector<1x128x128xf32>
    %132 = vector.shape_cast %131 : vector<1x128x128xf32> to vector<128x128xf32>
    %cst_99 = arith.constant dense<0.000000e+00> : vector<16x128xf32>
    %133 = tpu.matmul %73, %132, %cst_99 {dimension_numbers = #tpu.dot_dimension_numbers<[1], [0], [0], [1], [0, 0, 1, 1], [], []>} : vector<16x128xf32>, vector<128x128xf32>, vector<16x128xf32> -> vector<16x128xf32>
    %c1_100 = arith.constant 1 : index
    %c0_101 = arith.constant 0 : index
    %c0_102 = arith.constant 0 : index
    %134 = vector.load %arg12[%c1_100, %c0_101, %c0_102] : memref<2x128x128xf32, #tpu.memory_space<vmem>>, vector<1x128x128xf32>
    %135 = vector.shape_cast %134 : vector<1x128x128xf32> to vector<128x128xf32>
    %cst_103 = arith.constant dense<0.000000e+00> : vector<16x128xf32>
    %136 = tpu.matmul %130, %135, %cst_103 {dimension_numbers = #tpu.dot_dimension_numbers<[1], [0], [0], [1], [0, 0, 1, 1], [], []>} : vector<16x128xf32>, vector<128x128xf32>, vector<16x128xf32> -> vector<16x128xf32>
    %137 = arith.addf %133, %136 : vector<16x128xf32>
    %c1_104 = arith.constant 1 : index
    %c0_105 = arith.constant 0 : index
    %c0_106 = arith.constant 0 : index
    %138 = vector.load %arg13[%c1_104, %c0_105, %c0_106] : memref<2x1x128xf32, #tpu.memory_space<vmem>>, vector<1x1x128xf32>
    %139 = vector.shape_cast %138 : vector<1x1x128xf32> to vector<1x128xf32>
    %140 = vector.broadcast %139 : vector<1x128xf32> to vector<16x128xf32>
    %141 = arith.addf %137, %140 : vector<16x128xf32>
    %c1_107 = arith.constant 1 : index
    %c0_108 = arith.constant 0 : index
    %c0_109 = arith.constant 0 : index
    %142 = vector.load %arg14[%c1_107, %c0_108, %c0_109] : memref<2x1x128xf32, #tpu.memory_space<vmem>>, vector<1x1x128xf32>
    %143 = vector.shape_cast %142 : vector<1x1x128xf32> to vector<1x128xf32>
    %c1_110 = arith.constant 1 : index
    %c0_111 = arith.constant 0 : index
    %c0_112 = arith.constant 0 : index
    %144 = vector.load %arg15[%c1_110, %c0_111, %c0_112] : memref<2x1x128xf32, #tpu.memory_space<vmem>>, vector<1x1x128xf32>
    %145 = vector.shape_cast %144 : vector<1x1x128xf32> to vector<1x128xf32>
    %cst_113 = arith.constant dense<0.000000e+00> : vector<16xf32>
    %146 = vector.multi_reduction <add>, %141, %cst_113 [1] : vector<16x128xf32> to vector<16xf32>
    %147 = vector.shape_cast %146 : vector<16xf32> to vector<16x1xf32>
    %cst_114 = arith.constant 3.125000e-02 : f32
    %148 = vector.broadcast %cst_114 : f32 to vector<16x1xf32>
    %149 = arith.mulf %147, %148 : vector<16x1xf32>
    %150 = arith.mulf %141, %141 : vector<16x128xf32>
    %cst_115 = arith.constant dense<0.000000e+00> : vector<16xf32>
    %151 = vector.multi_reduction <add>, %150, %cst_115 [1] : vector<16x128xf32> to vector<16xf32>
    %152 = vector.shape_cast %151 : vector<16xf32> to vector<16x1xf32>
    %cst_116 = arith.constant 3.125000e-02 : f32
    %153 = vector.broadcast %cst_116 : f32 to vector<16x1xf32>
    %154 = arith.mulf %152, %153 : vector<16x1xf32>
    %155 = arith.mulf %149, %149 : vector<16x1xf32>
    %156 = arith.subf %154, %155 : vector<16x1xf32>
    %cst_117 = arith.constant 0.000000e+00 : f32
    %157 = vector.broadcast %cst_117 : f32 to vector<16x1xf32>
    %158 = arith.maximumf %156, %157 : vector<16x1xf32>
    %159 = vector.broadcast %149 : vector<16x1xf32> to vector<16x128xf32>
    %160 = arith.subf %141, %159 : vector<16x128xf32>
    %cst_118 = arith.constant 9.99999974E-6 : f32
    %161 = vector.broadcast %cst_118 : f32 to vector<16x1xf32>
    %162 = arith.addf %158, %161 : vector<16x1xf32>
    %163 = math.rsqrt %162 : vector<16x1xf32>
    %164 = vector.broadcast %163 : vector<16x1xf32> to vector<16x128xf32>
    %165 = arith.mulf %160, %164 : vector<16x128xf32>
    %166 = vector.broadcast %143 : vector<1x128xf32> to vector<16x128xf32>
    %167 = arith.mulf %165, %166 : vector<16x128xf32>
    %168 = vector.broadcast %145 : vector<1x128xf32> to vector<16x128xf32>
    %169 = arith.addf %167, %168 : vector<16x128xf32>
    %cst_119 = arith.constant 0.000000e+00 : f32
    %170 = vector.broadcast %cst_119 : f32 to vector<16x128xf32>
    %171 = arith.maximumf %169, %170 : vector<16x128xf32>
    %c0_120 = arith.constant 0 : index
    %c0_121 = arith.constant 0 : index
    %172 = vector.load %arg18[%c0_120, %c0_121] : memref<16x128xf32, #tpu.memory_space<vmem>>, vector<16x128xf32>
    tpu.vector_store %arg18[%c0_120, %c0_121], %171 {strides = array<i32>} : memref<16x128xf32, #tpu.memory_space<vmem>>, vector<16x128xf32>,
    return
  }
}

module attributes {stable_mosaic.version = 11 : i64} {
  func.func @_mlp_kernel(%arg0: i32, %arg1: memref<16x128xf32, #tpu.memory_space<vmem>>, %arg2: memref<1x128xf32, #tpu.memory_space<vmem>>, %arg3: memref<1x128xf32, #tpu.memory_space<vmem>>, %arg4: memref<128x128xf32, #tpu.memory_space<vmem>>, %arg5: memref<1x128xf32, #tpu.memory_space<vmem>>, %arg6: memref<128x128xf32, #tpu.memory_space<vmem>>, %arg7: memref<1x128xf32, #tpu.memory_space<vmem>>, %arg8: memref<16x128xf32, #tpu.memory_space<vmem>>) attributes {dimension_semantics = [#tpu.dimension_semantics<parallel>], iteration_bounds = array<i64: 1>, scalar_prefetch = 0 : i64, scratch_operands = 0 : i64, tpu.core_type = #tpu.core_type<tc>, window_params = [{transform_indices = @transform_0, window_bounds = array<i64: 16, 128>}, {pipeline_mode = #tpu.pipeline_mode<synchronous>, transform_indices = @transform_1, window_bounds = array<i64: 1, 128>}, {pipeline_mode = #tpu.pipeline_mode<synchronous>, transform_indices = @transform_2, window_bounds = array<i64: 1, 128>}, {pipeline_mode = #tpu.pipeline_mode<synchronous>, transform_indices = @transform_3, window_bounds = array<i64: 128, 128>}, {pipeline_mode = #tpu.pipeline_mode<synchronous>, transform_indices = @transform_4, window_bounds = array<i64: 1, 128>}, {pipeline_mode = #tpu.pipeline_mode<synchronous>, transform_indices = @transform_5, window_bounds = array<i64: 128, 128>}, {pipeline_mode = #tpu.pipeline_mode<synchronous>, transform_indices = @transform_6, window_bounds = array<i64: 1, 128>}, {transform_indices = @transform_7, window_bounds = array<i64: 16, 128>}]} {
    %c0 = arith.constant 0 : index
    %c0_0 = arith.constant 0 : index
    %0 = vector.load %arg1[%c0, %c0_0] : memref<16x128xf32, #tpu.memory_space<vmem>>, vector<16x128xf32>
    %c0_1 = arith.constant 0 : index
    %c0_2 = arith.constant 0 : index
    %1 = vector.load %arg2[%c0_1, %c0_2] : memref<1x128xf32, #tpu.memory_space<vmem>>, vector<1x128xf32>
    %c0_3 = arith.constant 0 : index
    %c0_4 = arith.constant 0 : index
    %2 = vector.load %arg3[%c0_3, %c0_4] : memref<1x128xf32, #tpu.memory_space<vmem>>, vector<1x128xf32>
    %cst = arith.constant dense<0.000000e+00> : vector<16xf32>
    %3 = vector.multi_reduction <add>, %0, %cst [1] : vector<16x128xf32> to vector<16xf32>
    %4 = vector.shape_cast %3 : vector<16xf32> to vector<16x1xf32>
    %cst_5 = arith.constant 6.250000e-02 : f32
    %5 = vector.broadcast %cst_5 : f32 to vector<16x1xf32>
    %6 = arith.mulf %4, %5 : vector<16x1xf32>
    %7 = arith.mulf %0, %0 : vector<16x128xf32>
    %cst_6 = arith.constant dense<0.000000e+00> : vector<16xf32>
    %8 = vector.multi_reduction <add>, %7, %cst_6 [1] : vector<16x128xf32> to vector<16xf32>
    %9 = vector.shape_cast %8 : vector<16xf32> to vector<16x1xf32>
    %cst_7 = arith.constant 6.250000e-02 : f32
    %10 = vector.broadcast %cst_7 : f32 to vector<16x1xf32>
    %11 = arith.mulf %9, %10 : vector<16x1xf32>
    %12 = arith.mulf %6, %6 : vector<16x1xf32>
    %13 = arith.subf %11, %12 : vector<16x1xf32>
    %cst_8 = arith.constant 0.000000e+00 : f32
    %14 = vector.broadcast %cst_8 : f32 to vector<16x1xf32>
    %15 = arith.maximumf %13, %14 : vector<16x1xf32>
    %16 = vector.broadcast %6 : vector<16x1xf32> to vector<16x128xf32>
    %17 = arith.subf %0, %16 : vector<16x128xf32>
    %cst_9 = arith.constant 9.99999974E-6 : f32
    %18 = vector.broadcast %cst_9 : f32 to vector<16x1xf32>
    %19 = arith.addf %15, %18 : vector<16x1xf32>
    %20 = math.rsqrt %19 : vector<16x1xf32>
    %21 = vector.broadcast %20 : vector<16x1xf32> to vector<16x128xf32>
    %22 = arith.mulf %17, %21 : vector<16x128xf32>
    %23 = vector.broadcast %1 : vector<1x128xf32> to vector<16x128xf32>
    %24 = arith.mulf %22, %23 : vector<16x128xf32>
    %25 = vector.broadcast %2 : vector<1x128xf32> to vector<16x128xf32>
    %26 = arith.addf %24, %25 : vector<16x128xf32>
    %c0_10 = arith.constant 0 : index
    %c0_11 = arith.constant 0 : index
    %27 = vector.load %arg4[%c0_10, %c0_11] : memref<128x128xf32, #tpu.memory_space<vmem>>, vector<128x128xf32>
    %cst_12 = arith.constant dense<0.000000e+00> : vector<16x128xf32>
    %28 = tpu.matmul %26, %27, %cst_12 {dimension_numbers = #tpu.dot_dimension_numbers<[1], [0], [0], [1], [0, 0, 1, 1], [], []>} : vector<16x128xf32>, vector<128x128xf32>, vector<16x128xf32> -> vector<16x128xf32>
    %c0_13 = arith.constant 0 : index
    %c0_14 = arith.constant 0 : index
    %29 = vector.load %arg5[%c0_13, %c0_14] : memref<1x128xf32, #tpu.memory_space<vmem>>, vector<1x128xf32>
    %30 = vector.broadcast %29 : vector<1x128xf32> to vector<16x128xf32>
    %31 = arith.addf %28, %30 : vector<16x128xf32>
    %cst_15 = arith.constant 0.000000e+00 : f32
    %32 = vector.broadcast %cst_15 : f32 to vector<16x128xf32>
    %33 = arith.maximumf %31, %32 : vector<16x128xf32>
    %c0_16 = arith.constant 0 : index
    %c0_17 = arith.constant 0 : index
    %34 = vector.load %arg6[%c0_16, %c0_17] : memref<128x128xf32, #tpu.memory_space<vmem>>, vector<128x128xf32>
    %cst_18 = arith.constant dense<0.000000e+00> : vector<16x128xf32>
    %35 = tpu.matmul %33, %34, %cst_18 {dimension_numbers = #tpu.dot_dimension_numbers<[1], [0], [0], [1], [0, 0, 1, 1], [], []>} : vector<16x128xf32>, vector<128x128xf32>, vector<16x128xf32> -> vector<16x128xf32>
    %c0_19 = arith.constant 0 : index
    %c0_20 = arith.constant 0 : index
    %36 = vector.load %arg7[%c0_19, %c0_20] : memref<1x128xf32, #tpu.memory_space<vmem>>, vector<1x128xf32>
    %37 = vector.broadcast %36 : vector<1x128xf32> to vector<16x128xf32>
    %38 = arith.addf %35, %37 : vector<16x128xf32>
    %c0_21 = arith.constant 0 : index
    %c0_22 = arith.constant 0 : index
    %39 = vector.load %arg8[%c0_21, %c0_22] : memref<16x128xf32, #tpu.memory_space<vmem>>, vector<16x128xf32>
    tpu.vector_store %arg8[%c0_21, %c0_22], %38 {strides = array<i32>} : memref<16x128xf32, #tpu.memory_space<vmem>>, vector<16x128xf32>,
    return
  }
  func.func @transform_0(%arg0: i32) -> (i32, i32) {
    %c0_i32 = arith.constant 0 : i32
    %c0_i32_0 = arith.constant 0 : i32
    return %arg0, %c0_i32 : i32, i32
  }
  func.func @transform_1(%arg0: i32) -> (i32, i32) {
    %c0_i32 = arith.constant 0 : i32
    %c0_i32_0 = arith.constant 0 : i32
    %c0_i32_1 = arith.constant 0 : i32
    return %c0_i32, %c0_i32_0 : i32, i32
  }
  func.func @transform_2(%arg0: i32) -> (i32, i32) {
    %c0_i32 = arith.constant 0 : i32
    %c0_i32_0 = arith.constant 0 : i32
    %c0_i32_1 = arith.constant 0 : i32
    return %c0_i32, %c0_i32_0 : i32, i32
  }
  func.func @transform_3(%arg0: i32) -> (i32, i32) {
    %c0_i32 = arith.constant 0 : i32
    %c0_i32_0 = arith.constant 0 : i32
    %c0_i32_1 = arith.constant 0 : i32
    return %c0_i32, %c0_i32_0 : i32, i32
  }
  func.func @transform_4(%arg0: i32) -> (i32, i32) {
    %c0_i32 = arith.constant 0 : i32
    %c0_i32_0 = arith.constant 0 : i32
    %c0_i32_1 = arith.constant 0 : i32
    return %c0_i32, %c0_i32_0 : i32, i32
  }
  func.func @transform_5(%arg0: i32) -> (i32, i32) {
    %c0_i32 = arith.constant 0 : i32
    %c0_i32_0 = arith.constant 0 : i32
    %c0_i32_1 = arith.constant 0 : i32
    return %c0_i32, %c0_i32_0 : i32, i32
  }
  func.func @transform_6(%arg0: i32) -> (i32, i32) {
    %c0_i32 = arith.constant 0 : i32
    %c0_i32_0 = arith.constant 0 : i32
    %c0_i32_1 = arith.constant 0 : i32
    return %c0_i32, %c0_i32_0 : i32, i32
  }
  func.func @transform_7(%arg0: i32) -> (i32, i32) {
    %c0_i32 = arith.constant 0 : i32
    %c0_i32_0 = arith.constant 0 : i32
    return %arg0, %c0_i32 : i32, i32
  }
}

module attributes {stable_mosaic.version = 11 : i64} {
  func.func @_mlp_kernel(%arg0: i32, %arg1: memref<16x128xf32, #tpu.memory_space<vmem>>, %arg2: memref<1x128xf32, #tpu.memory_space<vmem>>, %arg3: memref<1x128xf32, #tpu.memory_space<vmem>>, %arg4: memref<128x128xf32, #tpu.memory_space<vmem>>, %arg5: memref<1x128xf32, #tpu.memory_space<vmem>>, %arg6: memref<128x8xf32, #tpu.memory_space<vmem>>, %arg7: memref<1x8xf32, #tpu.memory_space<vmem>>, %arg8: memref<16x8xf32, #tpu.memory_space<vmem>>) attributes {dimension_semantics = [#tpu.dimension_semantics<parallel>], iteration_bounds = array<i64: 1>, scalar_prefetch = 0 : i64, scratch_operands = 0 : i64, tpu.core_type = #tpu.core_type<tc>, window_params = [{transform_indices = @transform_0, window_bounds = array<i64: 16, 128>}, {pipeline_mode = #tpu.pipeline_mode<synchronous>, transform_indices = @transform_1, window_bounds = array<i64: 1, 128>}, {pipeline_mode = #tpu.pipeline_mode<synchronous>, transform_indices = @transform_2, window_bounds = array<i64: 1, 128>}, {pipeline_mode = #tpu.pipeline_mode<synchronous>, transform_indices = @transform_3, window_bounds = array<i64: 128, 128>}, {pipeline_mode = #tpu.pipeline_mode<synchronous>, transform_indices = @transform_4, window_bounds = array<i64: 1, 128>}, {pipeline_mode = #tpu.pipeline_mode<synchronous>, transform_indices = @transform_5, window_bounds = array<i64: 128, 8>}, {pipeline_mode = #tpu.pipeline_mode<synchronous>, transform_indices = @transform_6, window_bounds = array<i64: 1, 8>}, {transform_indices = @transform_7, window_bounds = array<i64: 16, 8>}]} {
    %c0 = arith.constant 0 : index
    %c0_0 = arith.constant 0 : index
    %0 = vector.load %arg1[%c0, %c0_0] : memref<16x128xf32, #tpu.memory_space<vmem>>, vector<16x128xf32>
    %c0_1 = arith.constant 0 : index
    %c0_2 = arith.constant 0 : index
    %1 = vector.load %arg2[%c0_1, %c0_2] : memref<1x128xf32, #tpu.memory_space<vmem>>, vector<1x128xf32>
    %c0_3 = arith.constant 0 : index
    %c0_4 = arith.constant 0 : index
    %2 = vector.load %arg3[%c0_3, %c0_4] : memref<1x128xf32, #tpu.memory_space<vmem>>, vector<1x128xf32>
    %cst = arith.constant dense<0.000000e+00> : vector<16xf32>
    %3 = vector.multi_reduction <add>, %0, %cst [1] : vector<16x128xf32> to vector<16xf32>
    %4 = vector.shape_cast %3 : vector<16xf32> to vector<16x1xf32>
    %cst_5 = arith.constant 3.125000e-02 : f32
    %5 = vector.broadcast %cst_5 : f32 to vector<16x1xf32>
    %6 = arith.mulf %4, %5 : vector<16x1xf32>
    %7 = arith.mulf %0, %0 : vector<16x128xf32>
    %cst_6 = arith.constant dense<0.000000e+00> : vector<16xf32>
    %8 = vector.multi_reduction <add>, %7, %cst_6 [1] : vector<16x128xf32> to vector<16xf32>
    %9 = vector.shape_cast %8 : vector<16xf32> to vector<16x1xf32>
    %cst_7 = arith.constant 3.125000e-02 : f32
    %10 = vector.broadcast %cst_7 : f32 to vector<16x1xf32>
    %11 = arith.mulf %9, %10 : vector<16x1xf32>
    %12 = arith.mulf %6, %6 : vector<16x1xf32>
    %13 = arith.subf %11, %12 : vector<16x1xf32>
    %cst_8 = arith.constant 0.000000e+00 : f32
    %14 = vector.broadcast %cst_8 : f32 to vector<16x1xf32>
    %15 = arith.maximumf %13, %14 : vector<16x1xf32>
    %16 = vector.broadcast %6 : vector<16x1xf32> to vector<16x128xf32>
    %17 = arith.subf %0, %16 : vector<16x128xf32>
    %cst_9 = arith.constant 9.99999974E-6 : f32
    %18 = vector.broadcast %cst_9 : f32 to vector<16x1xf32>
    %19 = arith.addf %15, %18 : vector<16x1xf32>
    %20 = math.rsqrt %19 : vector<16x1xf32>
    %21 = vector.broadcast %20 : vector<16x1xf32> to vector<16x128xf32>
    %22 = arith.mulf %17, %21 : vector<16x128xf32>
    %23 = vector.broadcast %1 : vector<1x128xf32> to vector<16x128xf32>
    %24 = arith.mulf %22, %23 : vector<16x128xf32>
    %25 = vector.broadcast %2 : vector<1x128xf32> to vector<16x128xf32>
    %26 = arith.addf %24, %25 : vector<16x128xf32>
    %c0_10 = arith.constant 0 : index
    %c0_11 = arith.constant 0 : index
    %27 = vector.load %arg4[%c0_10, %c0_11] : memref<128x128xf32, #tpu.memory_space<vmem>>, vector<128x128xf32>
    %cst_12 = arith.constant dense<0.000000e+00> : vector<16x128xf32>
    %28 = tpu.matmul %26, %27, %cst_12 {dimension_numbers = #tpu.dot_dimension_numbers<[1], [0], [0], [1], [0, 0, 1, 1], [], []>} : vector<16x128xf32>, vector<128x128xf32>, vector<16x128xf32> -> vector<16x128xf32>
    %c0_13 = arith.constant 0 : index
    %c0_14 = arith.constant 0 : index
    %29 = vector.load %arg5[%c0_13, %c0_14] : memref<1x128xf32, #tpu.memory_space<vmem>>, vector<1x128xf32>
    %30 = vector.broadcast %29 : vector<1x128xf32> to vector<16x128xf32>
    %31 = arith.addf %28, %30 : vector<16x128xf32>
    %cst_15 = arith.constant 0.000000e+00 : f32
    %32 = vector.broadcast %cst_15 : f32 to vector<16x128xf32>
    %33 = arith.maximumf %31, %32 : vector<16x128xf32>
    %c0_16 = arith.constant 0 : index
    %c0_17 = arith.constant 0 : index
    %34 = vector.load %arg6[%c0_16, %c0_17] : memref<128x8xf32, #tpu.memory_space<vmem>>, vector<128x8xf32>
    %cst_18 = arith.constant dense<0.000000e+00> : vector<16x8xf32>
    %35 = tpu.matmul %33, %34, %cst_18 {dimension_numbers = #tpu.dot_dimension_numbers<[1], [0], [0], [1], [0, 0, 1, 1], [], []>} : vector<16x128xf32>, vector<128x8xf32>, vector<16x8xf32> -> vector<16x8xf32>
    %c0_19 = arith.constant 0 : index
    %c0_20 = arith.constant 0 : index
    %36 = vector.load %arg7[%c0_19, %c0_20] : memref<1x8xf32, #tpu.memory_space<vmem>>, vector<1x8xf32>
    %37 = vector.broadcast %36 : vector<1x8xf32> to vector<16x8xf32>
    %38 = arith.addf %35, %37 : vector<16x8xf32>
    %39 = arith.negf %38 : vector<16x8xf32>
    %40 = math.exp %39 : vector<16x8xf32>
    %cst_21 = arith.constant 1.000000e+00 : f32
    %41 = vector.broadcast %cst_21 : f32 to vector<16x8xf32>
    %42 = arith.addf %41, %40 : vector<16x8xf32>
    %43 = arith.divf %41, %42 : vector<16x8xf32>
    %c0_22 = arith.constant 0 : index
    %c0_23 = arith.constant 0 : index
    %44 = vector.load %arg8[%c0_22, %c0_23] : memref<16x8xf32, #tpu.memory_space<vmem>>, vector<16x8xf32>
    tpu.vector_store %arg8[%c0_22, %c0_23], %43 {strides = array<i32>} : memref<16x8xf32, #tpu.memory_space<vmem>>, vector<16x8xf32>,
    return
  }
  func.func @transform_0(%arg0: i32) -> (i32, i32) {
    %c0_i32 = arith.constant 0 : i32
    %c0_i32_0 = arith.constant 0 : i32
    return %arg0, %c0_i32 : i32, i32
  }
  func.func @transform_1(%arg0: i32) -> (i32, i32) {
    %c0_i32 = arith.constant 0 : i32
    %c0_i32_0 = arith.constant 0 : i32
    %c0_i32_1 = arith.constant 0 : i32
    return %c0_i32, %c0_i32_0 : i32, i32
  }
  func.func @transform_2(%arg0: i32) -> (i32, i32) {
    %c0_i32 = arith.constant 0 : i32
    %c0_i32_0 = arith.constant 0 : i32
    %c0_i32_1 = arith.constant 0 : i32
    return %c0_i32, %c0_i32_0 : i32, i32
  }
  func.func @transform_3(%arg0: i32) -> (i32, i32) {
    %c0_i32 = arith.constant 0 : i32
    %c0_i32_0 = arith.constant 0 : i32
    %c0_i32_1 = arith.constant 0 : i32
    return %c0_i32, %c0_i32_0 : i32, i32
  }
  func.func @transform_4(%arg0: i32) -> (i32, i32) {
    %c0_i32 = arith.constant 0 : i32
    %c0_i32_0 = arith.constant 0 : i32
    %c0_i32_1 = arith.constant 0 : i32
    return %c0_i32, %c0_i32_0 : i32, i32
  }
  func.func @transform_5(%arg0: i32) -> (i32, i32) {
    %c0_i32 = arith.constant 0 : i32
    %c0_i32_0 = arith.constant 0 : i32
    %c0_i32_1 = arith.constant 0 : i32
    return %c0_i32, %c0_i32_0 : i32, i32
  }
  func.func @transform_6(%arg0: i32) -> (i32, i32) {
    %c0_i32 = arith.constant 0 : i32
    %c0_i32_0 = arith.constant 0 : i32
    %c0_i32_1 = arith.constant 0 : i32
    return %c0_i32, %c0_i32_0 : i32, i32
  }
  func.func @transform_7(%arg0: i32) -> (i32, i32) {
    %c0_i32 = arith.constant 0 : i32
    %c0_i32_0 = arith.constant 0 : i32
    return %arg0, %c0_i32 : i32, i32
  }
}

</mosaic_0001>

<bundles_post_ra>
// kernel: hypergraph_model_forward.5
= control target key start
LH: loop header
LB: loop body
LE: loop exit
PB: predicated region body
PF: predicated region fallthrough
CT: control target
= control target key end

     0   :  { %12 = vsyncpa [#allocation3], 0  ;;  %s316_s0 = inlined_call_operand.vmem [shape: f32[8,128], index: 0, kind: input, shape index: {}]   ;;  %s317_s1 = inlined_call_operand.vmem [shape: f32[1,128], index: 1, kind: input, shape index: {}]   ;;  %s318_s2 = inlined_call_operand.vmem [shape: f32[1,128], index: 2, kind: input, shape index: {}]   ;;  %s319_s3 = inlined_call_operand.hbm [shape: f32[128,128], index: 3, kind: input, shape index: {}]   ;;  %s320_s4 = inlined_call_operand.vmem [shape: f32[1,128], index: 4, kind: input, shape index: {}]   ;;  %s321_s5 = inlined_call_operand.hbm [shape: f32[128,128], index: 5, kind: input, shape index: {}]   ;;  %s322_s6 = inlined_call_operand.vmem [shape: f32[1,128], index: 6, kind: input, shape index: {}]   ;;  %s323_s7 = inlined_call_operand.vmem [shape: f32[8,128], index: 7, kind: output, shape index: {}]  }
   0x1   :  { %s24_s26 = sshll.u32 %s319_s3, 4  ;;  %s25_s26 = int_to_ptr.hbm [resolvable:$true] %s24_s26 }
   0x2   :  { %13 = vsyncpa [#allocation5], 0  ;;  %s242_s27 = smov [#allocation2]   ;;  %s39_s8 = sshll.u32 %s321_s5, 4  ;;  %s40_s8 = int_to_ptr.hbm [resolvable:$true] %s39_s8 }
   0x3   :  { %s26_s28 = sshll.u32 %s242_s27, 4  ;;  %s243_s9 = smov 128   ;;  %s27_s28 = int_to_ptr.vmem [resolvable:$true] %s26_s28 }
   0x4   :  { %s244_s10 = smov 8   ;;  %s245_s11 = smov [#allocation4]  }
   0x5   :  { %32 = dma.hbm_to_vmem [thread:$0]  %s25_s26, 2048, %s27_s28, [#allocation3], %s243_s9, %s243_s9, %s244_s10  }
   0x6   :  { %s41_s12 = sshll.u32 %s245_s11, 4  ;;  %s42_s12 = int_to_ptr.vmem [resolvable:$true] %s41_s12 }
   0x7   :  { %47 = dma.hbm_to_vmem [thread:$0]  %s40_s8, 2048, %s42_s12, [#allocation5], %s243_s9, %s243_s9, %s244_s10  }
   0x8   :  { %238 = dma.done.wait [#allocation3], 2048  }
   0x9   :  { %239 = vsyncadd [#allocation3], 4294965248 }
   0xa   :  { %240 = dma.done.wait [#allocation5], 2048  }
   0xb   :  { %241 = vsyncadd [#allocation5], 4294965248  ;;  %v295_v0 = vld [vmem:[%s316_s0] sm:$0xff]  ;;  %v107_v2 = vld [vmem:[#allocation2 + $0x78] sm:$0xff] }
   0xc   :  { %61 = vadd.xlane.f32.xlu0 %v295_v0  ;;  %v64_v1 = vmul.f32 %v295_v0, %v295_v0  ;;  %112 = vmatpush.msra.mxu0 %v107_v2  ;;  %v106_v3 = vld [vmem:[#allocation2 + $0x70] sm:$0xff]  ;;  %v105_v4 = vld [vmem:[#allocation2 + $0x68] sm:$0xff]  ;;  %v104_v5 = vld [vmem:[#allocation2 + $0x60] sm:$0xff] }
   0xd   :  { %v103_v6 = vld [vmem:[#allocation2 + $0x58] sm:$0xff]  ;;  %v102_v7 = vld [vmem:[#allocation2 + $0x50] sm:$0xff]  ;;  %v101_v8 = vld [vmem:[#allocation2 + $0x48] sm:$0xff] }
   0xe   :  { %113 = vmatpush.msra.mxu0 %v106_v3  ;;  %v100_v9 = vld [vmem:[#allocation2 + $0x40] sm:$0xff]  ;;  %v99_v10 = vld [vmem:[#allocation2 + $0x38] sm:$0xff]  ;;  %v98_v11 = vld [vmem:[#allocation2 + $0x30] sm:$0xff] }
   0xf   :  { %v97_v12 = vld [vmem:[#allocation2 + $0x28] sm:$0xff]  ;;  %v96_v13 = vld [vmem:[#allocation2 + $0x20] sm:$0xff]  ;;  %v95_v14 = vld [vmem:[#allocation2 + $0x18] sm:$0xff] }
  0x10   :  { %114 = vmatpush.msra.mxu0 %v105_v4  ;;  %v94_v16 = vld [vmem:[#allocation2 + $0x10] sm:$0xff]  ;;  %v93_v17 = vld [vmem:[#allocation2 + $0x8] sm:$0xff]  ;;  %v92_v19 = vld [vmem:[#allocation2] sm:$0xff] }
  0x11   :  { %v148_v23 = vld [vmem:[#allocation4 + $0x78] sm:$0xff]  ;;  %v147_v24 = vld [vmem:[#allocation4 + $0x70] sm:$0xff]  ;;  %v146_v26 = vld [vmem:[#allocation4 + $0x68] sm:$0xff] }
  0x12   :  { %115 = vmatpush.msra.mxu0 %v104_v5  ;;  %153 = vmatpush.msra.mxu1 %v148_v23  ;;  %v145_v28 = vld [vmem:[#allocation4 + $0x60] sm:$0xff]  ;;  %v144_v30 = vld [vmem:[#allocation4 + $0x58] sm:$0xff]  ;;  %v143_v31 = vld [vmem:[#allocation4 + $0x50] sm:$0xff] }
  0x13   :  { %v142_v32 = vld [vmem:[#allocation4 + $0x48] sm:$0xff]  ;;  %v141_v33 = vld [vmem:[#allocation4 + $0x40] sm:$0xff]  ;;  %v140_v35 = vld [vmem:[#allocation4 + $0x38] sm:$0xff] }
  0x14   :  { %65 = vadd.xlane.f32.xlu0 %v64_v1  ;;  %116 = vmatpush.msra.mxu0 %v103_v6  ;;  %v139_v37 = vld [vmem:[#allocation4 + $0x30] sm:$0xff]  ;;  %v138_v39 = vld [vmem:[#allocation4 + $0x28] sm:$0xff]  ;;  %v137_v41 = vld [vmem:[#allocation4 + $0x20] sm:$0xff] }
  0x15   :  { %154 = vmatpush.msra.mxu1 %v147_v24  ;;  %v136_v43 = vld [vmem:[#allocation4 + $0x18] sm:$0xff]  ;;  %v184_v46 = vld [vmem:[%s317_s1] ss:$0 sm:$0xff]  ;;  %v135_v52 = vld [vmem:[#allocation4 + $0x10] sm:$0xff] }
  0x16   :  { %117 = vmatpush.msra.mxu0 %v102_v7  ;;  %v185_v49 = vld [vmem:[%s318_s2] ss:$0 sm:$0xff]  ;;  %v134_v53 = vld [vmem:[#allocation4 + $0x8] sm:$0xff] }
  0x17   :  { %155 = vmatpush.msra.mxu1 %v146_v26  ;;  %v133_v54 = vld [vmem:[#allocation4] sm:$0xff] }
  0x18   :  { %118 = vmatpush.msra.mxu0 %v101_v8  ;;  %v186_v55 = vld [vmem:[%s320_s4] ss:$0 sm:$0xff] }
  0x19   :  { %156 = vmatpush.msra.mxu1 %v145_v28  ;;  %v187_v59 = vld [vmem:[%s322_s6] ss:$0 sm:$0xff] }
  0x1a   :  { %119 = vmatpush.msra.mxu0 %v100_v9 }
  0x1b   :  { %157 = vmatpush.msra.mxu1 %v144_v30 }
  0x1c   :  { %120 = vmatpush.msra.mxu0 %v99_v10 }
  0x1d   :  { %158 = vmatpush.msra.mxu1 %v143_v31 }
  0x1e   :  { %121 = vmatpush.msra.mxu0 %v98_v11 }
  0x1f   :  { %159 = vmatpush.msra.mxu1 %v142_v32 }
  0x20   :  { %122 = vmatpush.msra.mxu0 %v97_v12 }
  0x21   :  { %160 = vmatpush.msra.mxu1 %v141_v33 }
  0x22   :  { %123 = vmatpush.msra.mxu0 %v96_v13 }
  0x23   :  { %161 = vmatpush.msra.mxu1 %v140_v35 }
  0x24   :  { %124 = vmatpush.msra.mxu0 %v95_v14 }
  0x25   :  { %162 = vmatpush.msra.mxu1 %v139_v37 }
  0x26   :  { %125 = vmatpush.msra.mxu0 %v94_v16 }
  0x27   :  { %163 = vmatpush.msra.mxu1 %v138_v39 }
  0x28   :  { %126 = vmatpush.msra.mxu0 %v93_v17 }
  0x29   :  { %164 = vmatpush.msra.mxu1 %v137_v41 }
  0x2a   :  { %127 = vmatpush.msra.mxu0 %v92_v19 }
  0x2b   :  { %165 = vmatpush.msra.mxu1 %v136_v43 }
  0x2d   :  { %166 = vmatpush.msra.mxu1 %v135_v52 }
  0x2f   :  { %167 = vmatpush.msra.mxu1 %v134_v53 }
  0x31   :  { %168 = vmatpush.msra.mxu1 %v133_v54 }
  0x7f   :  { %v62_v15 = vpop.xlane.xlu0 %61 }
  0x80   :  { %v63_v18 = vmul.f32 0.0625, %v62_v15 }
  0x82   :  { %v68_v21 = vmul.f32 %v63_v18, %v63_v18  ;;  %v71_v45 = vsub.f32 %v295_v0, %v63_v18 }
  0x87   :  { %v66_v20 = vpop.xlane.xlu0 %65 }
  0x88   :  { %v67_v22 = vmul.f32 0.0625, %v66_v20 }
  0x8a   :  { %v69_v25 = vsub.f32 %v67_v22, %v68_v21 }
  0x8c   :  { %v70_v27 = vmax.f32 %v69_v25, 0.0 }
  0x8e   :  { %v72_v29 = vadd.f32 1e-05, %v70_v27 }
  0x90   :  { %188 = vrsqrt.f32 %v72_v29  ;;  %vm79_vm1 = vweird.f32 %v72_v29 }
  0x96   :  { %v189_v34 = vpop.eup %188 }
  0x97   :  { %v74_v36 = vmul.f32 %v189_v34, %v72_v29  ;;  %vm80_vm0 = vweird.f32 %v189_v34 }
  0x98   :  { %vm81_vm2 = vmor %vm79_vm1, %vm80_vm0 }
  0x99   :  { %v75_v38 = vmul.f32 %v189_v34, %v74_v36 }
  0x9b   :  { %v76_v40 = vmul.f32 0.5, %v75_v38 }
  0x9d   :  { %v77_v42 = vsub.f32 1.5, %v76_v40 }
  0x9f   :  { %v78_v44 = vmul.f32 %v189_v34, %v77_v42 }
  0xa1   :  { %v82_v47 = vsel %vm81_vm2, %v189_v34, %v78_v44 }
  0xa2   :  { %v83_v48 = vmul.f32 %v82_v47, %v71_v45 }
  0xa4   :  { %v87_v50 = vmul.f32 %v184_v46, %v83_v48 }
  0xa6   :  { %v91_v51 = vadd.f32 %v185_v49, %v87_v50 }
  0xa8   :  { %128 = vmatmul.f32.vlgmr.msra.gmra.mxu0 %v91_v51 }
 0x125   :  { %v129_v56 = vpop.f32.mrf.mxu0 }
 0x126   :  { %v130_v57 = vadd.f32 %v186_v55, %v129_v56 }
 0x128   :  { %v132_v58 = vmax.f32 %v130_v57, 0.0 }
 0x12a   :  { %169 = vmatmul.f32.vlgmr.msra.gmra.mxu1 %v132_v58 }
 0x1a7   :  { %v170_v60 = vpop.f32.mrf.mxu1 }
 0x1a8   :  { %v171_v61 = vadd.f32 %v187_v59, %v170_v60 }
 0x1aa   :  { %173 = vst [vmem:[%s323_s7] sm:$0xff] %v171_v61 }
 0x1ab   :  { %178 = vsyncpa [#allocation3], 1 }
 0x1ac   :  { %179 = vsyncpa [#allocation5], 1 }

// kernel: hypergraph_model_forward.4
= control target key start
LH: loop header
LB: loop body
LE: loop exit
PB: predicated region body
PF: predicated region fallthrough
CT: control target
= control target key end

     0   :  { %12 = vsyncpa [#allocation3], 0  ;;  %s406_s0 = inlined_call_operand.vmem [shape: f32[16,128], index: 0, kind: input, shape index: {}]   ;;  %s407_s1 = inlined_call_operand.vmem [shape: f32[1,128], index: 1, kind: input, shape index: {}]   ;;  %s408_s2 = inlined_call_operand.vmem [shape: f32[1,128], index: 2, kind: input, shape index: {}]   ;;  %s409_s3 = inlined_call_operand.hbm [shape: f32[128,128], index: 3, kind: input, shape index: {}]   ;;  %s410_s4 = inlined_call_operand.vmem [shape: f32[1,128], index: 4, kind: input, shape index: {}]   ;;  %s411_s5 = inlined_call_operand.hbm [shape: f32[128,128], index: 5, kind: input, shape index: {}]   ;;  %s412_s6 = inlined_call_operand.vmem [shape: f32[1,128], index: 6, kind: input, shape index: {}]   ;;  %s413_s7 = inlined_call_operand.vmem [shape: f32[16,128], index: 7, kind: output, shape index: {}]  }
   0x1   :  { %s24_s26 = sshll.u32 %s409_s3, 4  ;;  %s25_s26 = int_to_ptr.hbm [resolvable:$true] %s24_s26 }
   0x2   :  { %13 = vsyncpa [#allocation5], 0  ;;  %s310_s27 = smov [#allocation2]   ;;  %s39_s8 = sshll.u32 %s411_s5, 4  ;;  %s40_s8 = int_to_ptr.hbm [resolvable:$true] %s39_s8 }
   0x3   :  { %s26_s28 = sshll.u32 %s310_s27, 4  ;;  %s311_s9 = smov 128   ;;  %s27_s28 = int_to_ptr.vmem [resolvable:$true] %s26_s28 }
   0x4   :  { %s312_s10 = smov 8   ;;  %s313_s11 = smov [#allocation4]  }
   0x5   :  { %32 = dma.hbm_to_vmem [thread:$0]  %s25_s26, 2048, %s27_s28, [#allocation3], %s311_s9, %s311_s9, %s312_s10  }
   0x6   :  { %s41_s12 = sshll.u32 %s313_s11, 4  ;;  %s42_s12 = int_to_ptr.vmem [resolvable:$true] %s41_s12 }
   0x7   :  { %47 = dma.hbm_to_vmem [thread:$0]  %s40_s8, 2048, %s42_s12, [#allocation5], %s311_s9, %s311_s9, %s312_s10  }
   0x8   :  { %306 = dma.done.wait [#allocation3], 2048  }
   0x9   :  { %307 = vsyncadd [#allocation3], 4294965248 }
   0xa   :  { %308 = dma.done.wait [#allocation5], 2048  }
   0xb   :  { %309 = vsyncadd [#allocation5], 4294965248  ;;  %v363_v0 = vld [vmem:[%s406_s0 + $0x8] sm:$0xff]  ;;  %v368_v1 = vld [vmem:[%s406_s0] sm:$0xff] }
   0xc   :  { %64 = vadd.xlane.f32.xlu0 %v363_v0  ;;  %62 = vadd.xlane.f32.xlu1 %v368_v1  ;;  %v69_v2 = vmul.f32 %v363_v0, %v363_v0  ;;  %v68_v3 = vmul.f32 %v368_v1, %v368_v1  ;;  %v133_v4 = vld [vmem:[#allocation2 + $0x78] sm:$0xff]  ;;  %v132_v5 = vld [vmem:[#allocation2 + $0x70] sm:$0xff]  ;;  %v131_v6 = vld [vmem:[#allocation2 + $0x68] sm:$0xff] }
   0xd   :  { %138 = vmatpush.msra.mxu0 %v133_v4  ;;  %214 = vmatpush.msra.mxu2 %v133_v4  ;;  %v130_v7 = vld [vmem:[#allocation2 + $0x60] sm:$0xff]  ;;  %v129_v8 = vld [vmem:[#allocation2 + $0x58] sm:$0xff]  ;;  %v128_v9 = vld [vmem:[#allocation2 + $0x50] sm:$0xff] }
   0xe   :  { %v127_v10 = vld [vmem:[#allocation2 + $0x48] sm:$0xff]  ;;  %v126_v11 = vld [vmem:[#allocation2 + $0x40] sm:$0xff]  ;;  %v125_v12 = vld [vmem:[#allocation2 + $0x38] sm:$0xff] }
   0xf   :  { %139 = vmatpush.msra.mxu0 %v132_v5  ;;  %215 = vmatpush.msra.mxu2 %v132_v5  ;;  %v124_v13 = vld [vmem:[#allocation2 + $0x30] sm:$0xff]  ;;  %v123_v14 = vld [vmem:[#allocation2 + $0x28] sm:$0xff]  ;;  %v122_v15 = vld [vmem:[#allocation2 + $0x20] sm:$0xff] }
  0x10   :  { %v121_v18 = vld [vmem:[#allocation2 + $0x18] sm:$0xff]  ;;  %v120_v19 = vld [vmem:[#allocation2 + $0x10] sm:$0xff]  ;;  %v119_v21 = vld [vmem:[#allocation2 + $0x8] sm:$0xff] }
  0x11   :  { %140 = vmatpush.msra.mxu0 %v131_v6  ;;  %216 = vmatpush.msra.mxu2 %v131_v6  ;;  %v118_v23 = vld [vmem:[#allocation2] sm:$0xff]  ;;  %v178_v30 = vld [vmem:[#allocation4 + $0x78] sm:$0xff]  ;;  %v177_v31 = vld [vmem:[#allocation4 + $0x70] sm:$0xff] }
  0x12   :  { %183 = vmatpush.msra.mxu1 %v178_v30  ;;  %230 = vmatpush.msra.mxu3 %v178_v30  ;;  %v176_v34 = vld [vmem:[#allocation4 + $0x68] sm:$0xff]  ;;  %v175_v37 = vld [vmem:[#allocation4 + $0x60] sm:$0xff]  ;;  %v174_v40 = vld [vmem:[#allocation4 + $0x58] sm:$0xff] }
  0x13   :  { %141 = vmatpush.msra.mxu0 %v130_v7  ;;  %217 = vmatpush.msra.mxu2 %v130_v7  ;;  %v173_v41 = vld [vmem:[#allocation4 + $0x50] sm:$0xff]  ;;  %v172_v42 = vld [vmem:[#allocation4 + $0x48] sm:$0xff]  ;;  %v171_v43 = vld [vmem:[#allocation4 + $0x40] sm:$0xff] }
  0x14   :  { %72 = vadd.xlane.f32.xlu0 %v69_v2  ;;  %70 = vadd.xlane.f32.xlu1 %v68_v3  ;;  %v170_v47 = vld [vmem:[#allocation4 + $0x38] sm:$0xff]  ;;  %v169_v50 = vld [vmem:[#allocation4 + $0x30] sm:$0xff]  ;;  %v168_v53 = vld [vmem:[#allocation4 + $0x28] sm:$0xff] }
  0x15   :  { %142 = vmatpush.msra.mxu0 %v129_v8  ;;  %218 = vmatpush.msra.mxu2 %v129_v8  ;;  %v167_v56 = vld [vmem:[#allocation4 + $0x20] sm:$0xff]  ;;  %v166_v59 = vld [vmem:[#allocation4 + $0x18] sm:$0xff] }
  0x16   :  { %184 = vmatpush.msra.mxu1 %v177_v31  ;;  %231 = vmatpush.msra.mxu3 %v177_v31  ;;  %v250_v62 = vld [vmem:[%s407_s1] ss:$0 sm:$0xff] }
  0x17   :  { %143 = vmatpush.msra.mxu0 %v128_v9  ;;  %219 = vmatpush.msra.mxu2 %v128_v9  ;;  %v251_v4 = vld [vmem:[%s408_s2] ss:$0 sm:$0xff] }
  0x18   :  { %185 = vmatpush.msra.mxu1 %v176_v34  ;;  %232 = vmatpush.msra.mxu3 %v176_v34 }
  0x19   :  { %144 = vmatpush.msra.mxu0 %v127_v10  ;;  %220 = vmatpush.msra.mxu2 %v127_v10  ;;  %v165_v10 = vld [vmem:[#allocation4 + $0x10] sm:$0xff] }
  0x1a   :  { %186 = vmatpush.msra.mxu1 %v175_v37  ;;  %233 = vmatpush.msra.mxu3 %v175_v37 }
  0x1b   :  { %145 = vmatpush.msra.mxu0 %v126_v11  ;;  %221 = vmatpush.msra.mxu2 %v126_v11  ;;  %v163_v11 = vld [vmem:[#allocation4] sm:$0xff] }
  0x1c   :  { %187 = vmatpush.msra.mxu1 %v174_v40  ;;  %234 = vmatpush.msra.mxu3 %v174_v40 }
  0x1d   :  { %146 = vmatpush.msra.mxu0 %v125_v12  ;;  %222 = vmatpush.msra.mxu2 %v125_v12  ;;  %v252_v12 = vld [vmem:[%s410_s4] ss:$0 sm:$0xff] }
  0x1e   :  { %188 = vmatpush.msra.mxu1 %v173_v41  ;;  %235 = vmatpush.msra.mxu3 %v173_v41 }
  0x1f   :  { %147 = vmatpush.msra.mxu0 %v124_v13  ;;  %223 = vmatpush.msra.mxu2 %v124_v13 }
  0x20   :  { %189 = vmatpush.msra.mxu1 %v172_v42  ;;  %236 = vmatpush.msra.mxu3 %v172_v42 }
  0x21   :  { %148 = vmatpush.msra.mxu0 %v123_v14  ;;  %224 = vmatpush.msra.mxu2 %v123_v14 }
  0x22   :  { %190 = vmatpush.msra.mxu1 %v171_v43  ;;  %237 = vmatpush.msra.mxu3 %v171_v43 }
  0x23   :  { %149 = vmatpush.msra.mxu0 %v122_v15  ;;  %225 = vmatpush.msra.mxu2 %v122_v15 }
  0x24   :  { %191 = vmatpush.msra.mxu1 %v170_v47  ;;  %238 = vmatpush.msra.mxu3 %v170_v47 }
  0x25   :  { %150 = vmatpush.msra.mxu0 %v121_v18  ;;  %226 = vmatpush.msra.mxu2 %v121_v18 }
  0x26   :  { %192 = vmatpush.msra.mxu1 %v169_v50  ;;  %239 = vmatpush.msra.mxu3 %v169_v50 }
  0x27   :  { %151 = vmatpush.msra.mxu0 %v120_v19  ;;  %227 = vmatpush.msra.mxu2 %v120_v19  ;;  %v253_v19 = vld [vmem:[%s412_s6] ss:$0 sm:$0xff] }
  0x28   :  { %193 = vmatpush.msra.mxu1 %v168_v53  ;;  %240 = vmatpush.msra.mxu3 %v168_v53 }
  0x29   :  { %152 = vmatpush.msra.mxu0 %v119_v21  ;;  %228 = vmatpush.msra.mxu2 %v119_v21 }
  0x2a   :  { %194 = vmatpush.msra.mxu1 %v167_v56  ;;  %241 = vmatpush.msra.mxu3 %v167_v56 }
  0x2b   :  { %153 = vmatpush.msra.mxu0 %v118_v23  ;;  %229 = vmatpush.msra.mxu2 %v118_v23 }
  0x2c   :  { %195 = vmatpush.msra.mxu1 %v166_v59  ;;  %242 = vmatpush.msra.mxu3 %v166_v59 }
  0x2e   :  { %196 = vmatpush.msra.mxu1 %v165_v10  ;;  %243 = vmatpush.msra.mxu3 %v165_v10 }
  0x7f   :  { %v65_v16 = vpop.xlane.xlu0 %64  ;;  %v63_v17 = vpop.xlane.xlu1 %62 }
  0x80   :  { %v376_v20 = vmul.f32 0.0625, %v63_v17  ;;  %v378_v22 = vmul.f32 0.0625, %v65_v16 }
  0x82   :  { %v76_v24 = vmul.f32 %v376_v20, %v376_v20  ;;  %v77_v27 = vmul.f32 %v378_v22, %v378_v22  ;;  %v83_v60 = vsub.f32 %v363_v0, %v378_v22  ;;  %v82_v63 = vsub.f32 %v368_v1, %v376_v20  ;;  %v164_v1 = vld [vmem:[#allocation4 + $0x8] sm:$0xff] }
  0x83   :  { %197 = vmatpush.msra.mxu1 %v164_v1  ;;  %244 = vmatpush.msra.mxu3 %v164_v1 }
  0x85   :  { %198 = vmatpush.msra.mxu1 %v163_v11  ;;  %245 = vmatpush.msra.mxu3 %v163_v11 }
  0x87   :  { %v73_v25 = vpop.xlane.xlu0 %72  ;;  %v71_v26 = vpop.xlane.xlu1 %70 }
  0x88   :  { %v75_v28 = vmul.f32 0.0625, %v73_v25  ;;  %v74_v29 = vmul.f32 0.0625, %v71_v26 }
  0x8a   :  { %v79_v32 = vsub.f32 %v75_v28, %v77_v27  ;;  %v78_v33 = vsub.f32 %v74_v29, %v76_v24 }
  0x8c   :  { %v81_v35 = vmax.f32 %v79_v32, 0.0  ;;  %v80_v36 = vmax.f32 %v78_v33, 0.0 }
  0x8e   :  { %v85_v38 = vadd.f32 1e-05, %v81_v35  ;;  %v84_v39 = vadd.f32 1e-05, %v80_v36 }
  0x90   :  { %254 = vrsqrt.f32 %v85_v38  ;;  %vm92_vm1 = vweird.f32 %v84_v39  ;;  %vm102_vm3 = vweird.f32 %v85_v38 }
  0x91   :  { %256 = vrsqrt.f32 %v84_v39 }
  0x96   :  { %v255_v44 = vpop.eup %254 }
  0x97   :  { %v257_v45 = vpop.eup %256  ;;  %v97_v46 = vmul.f32 %v255_v44, %v85_v38  ;;  %vm103_vm0 = vweird.f32 %v255_v44 }
  0x98   :  { %v87_v48 = vmul.f32 %v257_v45, %v84_v39  ;;  %vm93_vm2 = vweird.f32 %v257_v45  ;;  %vm104_vm4 = vmor %vm102_vm3, %vm103_vm0 }
  0x99   :  { %v98_v49 = vmul.f32 %v255_v44, %v97_v46  ;;  %vm94_vm5 = vmor %vm92_vm1, %vm93_vm2 }
  0x9a   :  { %v88_v51 = vmul.f32 %v257_v45, %v87_v48 }
  0x9b   :  { %v99_v52 = vmul.f32 0.5, %v98_v49 }
  0x9c   :  { %v89_v54 = vmul.f32 0.5, %v88_v51 }
  0x9d   :  { %v100_v55 = vsub.f32 1.5, %v99_v52 }
  0x9e   :  { %v90_v57 = vsub.f32 1.5, %v89_v54 }
  0x9f   :  { %v101_v58 = vmul.f32 %v255_v44, %v100_v55 }
  0xa0   :  { %v91_v61 = vmul.f32 %v257_v45, %v90_v57 }
  0xa1   :  { %v105_v2 = vsel %vm104_vm4, %v255_v44, %v101_v58 }
  0xa2   :  { %v95_v3 = vsel %vm94_vm5, %v257_v45, %v91_v61  ;;  %v107_v5 = vmul.f32 %v105_v2, %v83_v60 }
  0xa3   :  { %v106_v0 = vmul.f32 %v95_v3, %v82_v63 }
  0xa4   :  { %v112_v6 = vmul.f32 %v250_v62, %v107_v5 }
  0xa5   :  { %v111_v7 = vmul.f32 %v250_v62, %v106_v0 }
  0xa6   :  { %v117_v8 = vadd.f32 %v251_v4, %v112_v6 }
  0xa7   :  { %v116_v9 = vadd.f32 %v251_v4, %v111_v7 }
  0xa8   :  { %157 = vmatmul.f32.vlgmr.msra.gmra.mxu2 %v117_v8 }
  0xa9   :  { %154 = vmatmul.f32.vlgmr.msra.gmra.mxu0 %v116_v9 }
 0x126   :  { %v155_v13 = vpop.f32.mrf.mxu0 }
 0x127   :  { %v156_v14 = vadd.f32 %v252_v12, %v155_v13 }
 0x129   :  { %v161_v15 = vmax.f32 %v156_v14, 0.0 }
 0x12b   :  { %199 = vmatmul.f32.vlgmr.msra.gmra.mxu1 %v161_v15  ;;  %v158_v16 = vpop.f32.mrf.mxu2 }
 0x12c   :  { %v159_v17 = vadd.f32 %v252_v12, %v158_v16 }
 0x12e   :  { %v162_v18 = vmax.f32 %v159_v17, 0.0 }
 0x130   :  { %202 = vmatmul.f32.vlgmr.msra.gmra.mxu3 %v162_v18 }
 0x1a8   :  { %v200_v20 = vpop.f32.mrf.mxu1 }
 0x1a9   :  { %v201_v21 = vadd.f32 %v253_v19, %v200_v20 }
 0x1ab   :  { %206 = vst [vmem:[%s413_s7] sm:$0xff] %v201_v21 }
 0x1b3   :  { %v203_v22 = vpop.f32.mrf.mxu3 }
 0x1b4   :  { %v204_v23 = vadd.f32 %v253_v19, %v203_v22 }
 0x1b6   :  { %207 = vst [vmem:[%s413_s7 + $0x8] sm:$0xff] %v204_v23 }
 0x1b7   :  { %212 = vsyncpa [#allocation3], 1 }
 0x1b8   :  { %213 = vsyncpa [#allocation5], 1 }

// kernel: hypergraph_model_forward.7
= control target key start
LH: loop header
LB: loop body
LE: loop exit
PB: predicated region body
PF: predicated region fallthrough
CT: control target
= control target key end

     0   :  { %vm212_vm9 = vcmask 64512   ;;  %s453_s0 = inlined_call_operand.vmem [shape: f32[16,128], index: 0, kind: input, shape index: {}]   ;;  %s454_s1 = inlined_call_operand.vmem [shape: f32[1,128], index: 1, kind: input, shape index: {}]   ;;  %s455_s2 = inlined_call_operand.vmem [shape: f32[1,128], index: 2, kind: input, shape index: {}]   ;;  %s456_s4 = inlined_call_operand.vmem [shape: f32[1,128], index: 4, kind: input, shape index: {}]   ;;  %s457_s3 = inlined_call_operand.vmem [shape: f32[128,128], index: 3, kind: input, shape index: {}]   ;;  %s458_s5 = inlined_call_operand.vmem [shape: f32[128,8], index: 5, kind: input, shape index: {}]   ;;  %s459_s6 = inlined_call_operand.vmem [shape: f32[1,8], index: 6, kind: input, shape index: {}]   ;;  %s460_s7 = inlined_call_operand.vmem [shape: f32[16,8], index: 7, kind: output, shape index: {}]  }
   0x1   :  { %v312_v0 = vld [vmem:[%s453_s0 + $0x8] sm:$0xff]  ;;  %v317_v1 = vld [vmem:[%s453_s0] sm:$0xff]  ;;  %v101_v4 = vld [vmem:[%s457_s3 + $0x78] sm:$0xff] }
   0x2   :  { %32 = vadd.xlane.f32.xlu0 %v312_v0  ;;  %30 = vadd.xlane.f32.xlu1 %v317_v1  ;;  %v37_v2 = vmul.f32 %v312_v0, %v312_v0  ;;  %v36_v3 = vmul.f32 %v317_v1, %v317_v1  ;;  %v100_v5 = vld [vmem:[%s457_s3 + $0x70] sm:$0xff]  ;;  %v99_v6 = vld [vmem:[%s457_s3 + $0x68] sm:$0xff]  ;;  %v98_v7 = vld [vmem:[%s457_s3 + $0x60] sm:$0xff] }
   0x3   :  { %106 = vmatpush.msra.mxu0 %v101_v4  ;;  %221 = vmatpush.msra.mxu2 %v101_v4  ;;  %v97_v8 = vld [vmem:[%s457_s3 + $0x58] sm:$0xff]  ;;  %v96_v9 = vld [vmem:[%s457_s3 + $0x50] sm:$0xff]  ;;  %v95_v10 = vld [vmem:[%s457_s3 + $0x48] sm:$0xff] }
   0x4   :  { %v94_v11 = vld [vmem:[%s457_s3 + $0x40] sm:$0xff]  ;;  %v93_v12 = vld [vmem:[%s457_s3 + $0x38] sm:$0xff]  ;;  %v92_v13 = vld [vmem:[%s457_s3 + $0x30] sm:$0xff] }
   0x5   :  { %107 = vmatpush.msra.mxu0 %v100_v5  ;;  %222 = vmatpush.msra.mxu2 %v100_v5  ;;  %v91_v14 = vld [vmem:[%s457_s3 + $0x28] sm:$0xff]  ;;  %v90_v15 = vld [vmem:[%s457_s3 + $0x20] sm:$0xff]  ;;  %v89_v18 = vld [vmem:[%s457_s3 + $0x18] sm:$0xff] }
   0x6   :  { %v88_v19 = vld [vmem:[%s457_s3 + $0x10] sm:$0xff]  ;;  %v87_v21 = vld [vmem:[%s457_s3 + $0x8] sm:$0xff]  ;;  %v86_v23 = vld [vmem:[%s457_s3] sm:$0xff] }
   0x7   :  { %108 = vmatpush.msra.mxu0 %v99_v6  ;;  %223 = vmatpush.msra.mxu2 %v99_v6  ;;  %v146_v30 = vld [vmem:[%s458_s5 + $0x78] sm:$0xff]  ;;  %v145_v31 = vld [vmem:[%s458_s5 + $0x70] sm:$0xff]  ;;  %v144_v34 = vld [vmem:[%s458_s5 + $0x68] sm:$0xff] }
   0x8   :  { %151 = vmatpush.msra.mxu1 %v146_v30  ;;  %237 = vmatpush.msra.mxu3 %v146_v30  ;;  %v143_v37 = vld [vmem:[%s458_s5 + $0x60] sm:$0xff]  ;;  %v142_v40 = vld [vmem:[%s458_s5 + $0x58] sm:$0xff]  ;;  %v141_v41 = vld [vmem:[%s458_s5 + $0x50] sm:$0xff] }
   0x9   :  { %109 = vmatpush.msra.mxu0 %v98_v7  ;;  %224 = vmatpush.msra.mxu2 %v98_v7  ;;  %v140_v42 = vld [vmem:[%s458_s5 + $0x48] sm:$0xff]  ;;  %v139_v43 = vld [vmem:[%s458_s5 + $0x40] sm:$0xff]  ;;  %v138_v47 = vld [vmem:[%s458_s5 + $0x38] sm:$0xff] }
   0xa   :  { %40 = vadd.xlane.f32.xlu0 %v37_v2  ;;  %38 = vadd.xlane.f32.xlu1 %v36_v3  ;;  %v137_v50 = vld [vmem:[%s458_s5 + $0x30] sm:$0xff]  ;;  %v136_v53 = vld [vmem:[%s458_s5 + $0x28] sm:$0xff]  ;;  %v135_v56 = vld [vmem:[%s458_s5 + $0x20] sm:$0xff] }
   0xb   :  { %110 = vmatpush.msra.mxu0 %v97_v8  ;;  %225 = vmatpush.msra.mxu2 %v97_v8  ;;  %v134_v59 = vld [vmem:[%s458_s5 + $0x18] sm:$0xff]  ;;  %v253_v62 = vld [vmem:[%s454_s1] ss:$0 sm:$0xff] }
   0xc   :  { %152 = vmatpush.msra.mxu1 %v145_v31  ;;  %238 = vmatpush.msra.mxu3 %v145_v31  ;;  %v254_v4 = vld [vmem:[%s455_s2] ss:$0 sm:$0xff] }
   0xd   :  { %111 = vmatpush.msra.mxu0 %v96_v9  ;;  %226 = vmatpush.msra.mxu2 %v96_v9 }
   0xe   :  { %153 = vmatpush.msra.mxu1 %v144_v34  ;;  %239 = vmatpush.msra.mxu3 %v144_v34 }
   0xf   :  { %112 = vmatpush.msra.mxu0 %v95_v10  ;;  %227 = vmatpush.msra.mxu2 %v95_v10  ;;  %v132_v10 = vld [vmem:[%s458_s5 + $0x8] sm:$0xff] }
  0x10   :  { %154 = vmatpush.msra.mxu1 %v143_v37  ;;  %240 = vmatpush.msra.mxu3 %v143_v37 }
  0x11   :  { %113 = vmatpush.msra.mxu0 %v94_v11  ;;  %228 = vmatpush.msra.mxu2 %v94_v11  ;;  %v131_v11 = vld [vmem:[%s458_s5] sm:$0xff] }
  0x12   :  { %155 = vmatpush.msra.mxu1 %v142_v40  ;;  %241 = vmatpush.msra.mxu3 %v142_v40 }
  0x13   :  { %114 = vmatpush.msra.mxu0 %v93_v12  ;;  %229 = vmatpush.msra.mxu2 %v93_v12  ;;  %v255_v12 = vld [vmem:[%s456_s4] ss:$0 sm:$0xff] }
  0x14   :  { %156 = vmatpush.msra.mxu1 %v141_v41  ;;  %242 = vmatpush.msra.mxu3 %v141_v41 }
  0x15   :  { %115 = vmatpush.msra.mxu0 %v92_v13  ;;  %230 = vmatpush.msra.mxu2 %v92_v13 }
  0x16   :  { %157 = vmatpush.msra.mxu1 %v140_v42  ;;  %243 = vmatpush.msra.mxu3 %v140_v42 }
  0x17   :  { %116 = vmatpush.msra.mxu0 %v91_v14  ;;  %231 = vmatpush.msra.mxu2 %v91_v14 }
  0x18   :  { %158 = vmatpush.msra.mxu1 %v139_v43  ;;  %244 = vmatpush.msra.mxu3 %v139_v43 }
  0x19   :  { %117 = vmatpush.msra.mxu0 %v90_v15  ;;  %232 = vmatpush.msra.mxu2 %v90_v15 }
  0x1a   :  { %159 = vmatpush.msra.mxu1 %v138_v47  ;;  %245 = vmatpush.msra.mxu3 %v138_v47 }
  0x1b   :  { %118 = vmatpush.msra.mxu0 %v89_v18  ;;  %233 = vmatpush.msra.mxu2 %v89_v18 }
  0x1c   :  { %160 = vmatpush.msra.mxu1 %v137_v50  ;;  %246 = vmatpush.msra.mxu3 %v137_v50 }
  0x1d   :  { %119 = vmatpush.msra.mxu0 %v88_v19  ;;  %234 = vmatpush.msra.mxu2 %v88_v19  ;;  %v256_v19 = vld [vmem:[%s459_s6] ss:$0 sm:$0xff] }
  0x1e   :  { %161 = vmatpush.msra.mxu1 %v136_v53  ;;  %247 = vmatpush.msra.mxu3 %v136_v53 }
  0x1f   :  { %120 = vmatpush.msra.mxu0 %v87_v21  ;;  %235 = vmatpush.msra.mxu2 %v87_v21 }
  0x20   :  { %162 = vmatpush.msra.mxu1 %v135_v56  ;;  %248 = vmatpush.msra.mxu3 %v135_v56 }
  0x21   :  { %121 = vmatpush.msra.mxu0 %v86_v23  ;;  %236 = vmatpush.msra.mxu2 %v86_v23 }
  0x22   :  { %163 = vmatpush.msra.mxu1 %v134_v59  ;;  %249 = vmatpush.msra.mxu3 %v134_v59 }
  0x75   :  { %v33_v16 = vpop.xlane.xlu0 %32  ;;  %v31_v17 = vpop.xlane.xlu1 %30 }
  0x76   :  { %v367_v20 = vmul.f32 0.03125, %v31_v17  ;;  %v372_v22 = vmul.f32 0.03125, %v33_v16 }
  0x78   :  { %v44_v24 = vmul.f32 %v367_v20, %v367_v20  ;;  %v45_v27 = vmul.f32 %v372_v22, %v372_v22  ;;  %v51_v60 = vsub.f32 %v312_v0, %v372_v22  ;;  %v50_v63 = vsub.f32 %v317_v1, %v367_v20  ;;  %v133_v1 = vld [vmem:[%s458_s5 + $0x10] sm:$0xff] }
  0x79   :  { %164 = vmatpush.msra.mxu1 %v133_v1  ;;  %250 = vmatpush.msra.mxu3 %v133_v1 }
  0x7b   :  { %165 = vmatpush.msra.mxu1 %v132_v10  ;;  %251 = vmatpush.msra.mxu3 %v132_v10 }
  0x7d   :  { %v41_v25 = vpop.xlane.xlu0 %40  ;;  %v39_v26 = vpop.xlane.xlu1 %38  ;;  %166 = vmatpush.msra.mxu1 %v131_v11  ;;  %252 = vmatpush.msra.mxu3 %v131_v11 }
  0x7e   :  { %v43_v28 = vmul.f32 0.03125, %v41_v25  ;;  %v42_v29 = vmul.f32 0.03125, %v39_v26 }
  0x80   :  { %v47_v32 = vsub.f32 %v43_v28, %v45_v27  ;;  %v46_v33 = vsub.f32 %v42_v29, %v44_v24 }
  0x82   :  { %v49_v35 = vmax.f32 %v47_v32, 0.0  ;;  %v48_v36 = vmax.f32 %v46_v33, 0.0 }
  0x84   :  { %v53_v38 = vadd.f32 1e-05, %v49_v35  ;;  %v52_v39 = vadd.f32 1e-05, %v48_v36 }
  0x86   :  { %257 = vrsqrt.f32 %v53_v38  ;;  %vm60_vm1 = vweird.f32 %v52_v39  ;;  %vm70_vm3 = vweird.f32 %v53_v38 }
  0x87   :  { %259 = vrsqrt.f32 %v52_v39 }
  0x8c   :  { %v258_v44 = vpop.eup %257 }
  0x8d   :  { %v260_v45 = vpop.eup %259  ;;  %v65_v46 = vmul.f32 %v258_v44, %v53_v38  ;;  %vm71_vm0 = vweird.f32 %v258_v44 }
  0x8e   :  { %v55_v48 = vmul.f32 %v260_v45, %v52_v39  ;;  %vm61_vm2 = vweird.f32 %v260_v45  ;;  %vm72_vm4 = vmor %vm70_vm3, %vm71_vm0 }
  0x8f   :  { %v66_v49 = vmul.f32 %v258_v44, %v65_v46  ;;  %vm62_vm5 = vmor %vm60_vm1, %vm61_vm2 }
  0x90   :  { %v56_v51 = vmul.f32 %v260_v45, %v55_v48 }
  0x91   :  { %v67_v52 = vmul.f32 0.5, %v66_v49 }
  0x92   :  { %v57_v54 = vmul.f32 0.5, %v56_v51 }
  0x93   :  { %v68_v55 = vsub.f32 1.5, %v67_v52 }
  0x94   :  { %v58_v57 = vsub.f32 1.5, %v57_v54 }
  0x95   :  { %v69_v58 = vmul.f32 %v258_v44, %v68_v55 }
  0x96   :  { %v59_v61 = vmul.f32 %v260_v45, %v58_v57 }
  0x97   :  { %v73_v2 = vsel %vm72_vm4, %v258_v44, %v69_v58 }
  0x98   :  { %v63_v3 = vsel %vm62_vm5, %v260_v45, %v59_v61  ;;  %v75_v5 = vmul.f32 %v73_v2, %v51_v60 }
  0x99   :  { %v74_v0 = vmul.f32 %v63_v3, %v50_v63 }
  0x9a   :  { %v80_v6 = vmul.f32 %v253_v62, %v75_v5 }
  0x9b   :  { %v79_v7 = vmul.f32 %v253_v62, %v74_v0 }
  0x9c   :  { %v85_v8 = vadd.f32 %v254_v4, %v80_v6 }
  0x9d   :  { %v84_v9 = vadd.f32 %v254_v4, %v79_v7 }
  0x9e   :  { %125 = vmatmul.f32.vlgmr.msra.gmra.mxu2 %v85_v8 }
  0x9f   :  { %122 = vmatmul.f32.vlgmr.msra.gmra.mxu0 %v84_v9 }
 0x11c   :  { %v123_v13 = vpop.f32.mrf.mxu0 }
 0x11d   :  { %v124_v14 = vadd.f32 %v255_v12, %v123_v13 }
 0x11f   :  { %v129_v15 = vmax.f32 %v124_v14, 0.0 }
 0x121   :  { %167 = vmatmul.f32.vlgmr.msra.gmra.mxu1 %v129_v15  ;;  %v126_v16 = vpop.f32.mrf.mxu2 }
 0x122   :  { %v127_v17 = vadd.f32 %v255_v12, %v126_v16 }
 0x124   :  { %v130_v18 = vmax.f32 %v127_v17, 0.0 }
 0x126   :  { %170 = vmatmul.f32.vlgmr.msra.gmra.mxu3 %v130_v18 }
 0x19e   :  { %v168_v20 = vpop.f32.mrf.mxu1 }
 0x19f   :  { %v169_v21 = vadd.f32 %v256_v19, %v168_v20 }
 0x1a1   :  { %v219_v22 = vmul.f32 -1.442695, %v169_v21 }
 0x1a3   :  { %261 = vpow2.f32 %v219_v22 }
 0x1a9   :  { %v262_v23 = vpop.eup %261  ;;  %v171_v24 = vpop.f32.mrf.mxu3 }
 0x1aa   :  { %v180_v25 = vadd.f32 1.0, %v262_v23  ;;  %v172_v26 = vadd.f32 %v256_v19, %v171_v24 }
 0x1ac   :  { %263 = vrcp.f32 %v180_v25  ;;  %v220_v27 = vmul.f32 -1.442695, %v172_v26  ;;  %v193_v32 = vand.u32 2147483648, %v180_v25  ;;  %v191_v35 = vand.u32 2147483647, %v180_v25 }
 0x1ad   :  { %vm187_vm7 = vweird.f32 %v180_v25 }
 0x1ae   :  { %265 = vpow2.f32 %v220_v27  ;;  %v194_v37 = vor.u32 1.1754944e-38, %v193_v32  ;;  %vm192_vm10 = vcmp.eq.f32.partialorder %v191_v35, 8.507059e+37 }
 0x1b2   :  { %v264_v28 = vpop.eup %263 }
 0x1b3   :  { %v183_v29 = vmul.f32 %v264_v28, %v180_v25  ;;  %vm188_vm6 = vweird.f32 %v264_v28 }
 0x1b4   :  { %v266_v30 = vpop.eup %265  ;;  %vm189_vm8 = vmor %vm187_vm7, %vm188_vm6 }
 0x1b5   :  { %v184_v31 = vsub.f32 1.0, %v183_v29  ;;  %v181_v33 = vadd.f32 1.0, %v266_v30 }
 0x1b7   :  { %v185_v34 = vmul.f32 %v264_v28, %v184_v31  ;;  %267 = vrcp.f32 %v181_v33  ;;  %v208_v43 = vand.u32 2147483648, %v181_v33  ;;  %v206_v45 = vand.u32 2147483647, %v181_v33 }
 0x1b8   :  { %vm202_vm12 = vweird.f32 %v181_v33 }
 0x1b9   :  { %v186_v36 = vadd.f32 %v264_v28, %v185_v34  ;;  %v209_v47 = vor.u32 1.1754944e-38, %v208_v43  ;;  %vm207_vm14 = vcmp.eq.f32.partialorder %v206_v45, 8.507059e+37 }
 0x1bb   :  { %v190_v38 = vsel %vm189_vm8, %v264_v28, %v186_v36 }
 0x1bc   :  { %v195_v39 = vsel %vm192_vm10, %v194_v37, %v190_v38 }
 0x1bd   :  { %213 = vst.msk [vmem:[%s460_s7] sm:$0xff] %vm212_vm9, %v195_v39  ;;  %v268_v40 = vpop.eup %267 }
 0x1be   :  { %v198_v41 = vmul.f32 %v268_v40, %v181_v33  ;;  %vm203_vm11 = vweird.f32 %v268_v40 }
 0x1bf   :  { %vm204_vm13 = vmor %vm202_vm12, %vm203_vm11 }
 0x1c0   :  { %v199_v42 = vsub.f32 1.0, %v198_v41 }
 0x1c2   :  { %v200_v44 = vmul.f32 %v268_v40, %v199_v42 }
 0x1c4   :  { %v201_v46 = vadd.f32 %v268_v40, %v200_v44 }
 0x1c6   :  { %v205_v48 = vsel %vm204_vm13, %v268_v40, %v201_v46 }
 0x1c7   :  { %v210_v49 = vsel %vm207_vm14, %v209_v47, %v205_v48 }
 0x1c8   :  { %214 = vst.msk [vmem:[%s460_s7 + $0x8] sm:$0xff] %vm212_vm9, %v210_v49 }

// kernel: hypergraph_model_forward.6
= control target key start
LH: loop header
LB: loop body
LE: loop exit
PB: predicated region body
PF: predicated region fallthrough
CT: control target
= control target key end

     0   :  { %s1391_s0 = inlined_call_operand.vmem [shape: f32[16,128], index: 0, kind: input, shape index: {}]   ;;  %s1392_s1 = inlined_call_operand.vmem [shape: f32[8,128], index: 1, kind: input, shape index: {}]   ;;  %s1393_s2 = inlined_call_operand.vmem [shape: bf16[16,8], index: 2, kind: input, shape index: {}]   ;;  %s1394_s3 = inlined_call_operand.vmem [shape: bf16[8,16], index: 3, kind: input, shape index: {}]   ;;  %s1395_s4 = inlined_call_operand.hbm [shape: f32[2,128,128], index: 4, kind: input, shape index: {}]   ;;  %s1396_s5 = inlined_call_operand.vmem [shape: f32[2,1,128], index: 5, kind: input, shape index: {}]   ;;  %s1397_s6 = inlined_call_operand.hbm [shape: f32[2,128,128], index: 6, kind: input, shape index: {}]   ;;  %s1398_s7 = inlined_call_operand.vmem [shape: f32[2,1,128], index: 7, kind: input, shape index: {}]   ;;  %s1399_s8 = inlined_call_operand.hbm [shape: f32[2,128,128], index: 8, kind: input, shape index: {}]   ;;  %s1400_s9 = inlined_call_operand.hbm [shape: f32[2,128,128], index: 9, kind: input, shape index: {}]   ;;  %s1401_s10 = inlined_call_operand.vmem [shape: f32[2,1,128], index: 10, kind: input, shape index: {}]   ;;  %s1402_s11 = inlined_call_operand.hbm [shape: f32[2,128,128], index: 11, kind: input, shape index: {}]   ;;  %s1403_s12 = inlined_call_operand.hbm [shape: f32[2,128,128], index: 12, kind: input, shape index: {}]   ;;  %s1404_s13 = inlined_call_operand.vmem [shape: f32[2,1,128], index: 13, kind: input, shape index: {}]   ;;  %s1405_s14 = inlined_call_operand.vmem [shape: f32[2,1,128], index: 14, kind: input, shape index: {}]   ;;  %s1406_s15 = inlined_call_operand.vmem [shape: f32[2,1,128], index: 15, kind: input, shape index: {}]   ;;  %s1407_s16 = inlined_call_operand.vmem [shape: f32[2,1,128], index: 16, kind: input, shape index: {}]   ;;  %s1408_s17 = inlined_call_operand.vmem [shape: f32[2,1,128], index: 17, kind: input, shape index: {}]   ;;  %s1409_s18 = inlined_call_operand.vmem [shape: f32[16,128], index: 18, kind: output, shape index: {}]  }
   0x1   :  { %1411 = sst [smem:[#allocation16_spill]] %s1391_s0 }
   0x2   :  { %1412 = sst [smem:[#allocation17_spill]] %s1392_s1 }
   0x3   :  { %1413 = sst [smem:[#allocation18_spill]] %s1393_s2 }
   0x4   :  { %23 = vsyncpa [#allocation3], 0 }
   0x5   :  { %24 = vsyncpa [#allocation5], 0 }
   0x6   :  { %25 = vsyncpa [#allocation8], 0 }
   0x7   :  { %26 = vsyncpa [#allocation11], 0  ;;  %s54_s29 = sshll.u32 %s1397_s6, 4  ;;  %s1123_s30 = smov [#allocation4]   ;;  %s55_s29 = int_to_ptr.hbm [resolvable:$true] %s54_s29 }
   0x8   :  { %s56_s0 = sshll.u32 %s1123_s30, 4  ;;  %s82_s20 = sshll.u32 %s1400_s9, 4  ;;  %s57_s0 = int_to_ptr.vmem [resolvable:$true] %s56_s0  ;;  %s83_s20 = int_to_ptr.hbm [resolvable:$true] %s82_s20 }
   0x9   :  { %s1124_s21 = smov 128   ;;  %s1125_s22 = smov 8  }
   0xa   :  { %62 = dma.hbm_to_vmem [thread:$0]  %s55_s29, 4096, %s57_s0, [#allocation5], %s1124_s21, %s1124_s21, %s1125_s22  }
   0xb   :  { %s1126_s2 = smov [#allocation7]   ;;  %s39_s6 = sshll.u32 %s1395_s4, 4  ;;  %s40_s6 = int_to_ptr.hbm [resolvable:$true] %s39_s6 }
   0xc   :  { %s84_s23 = sshll.u32 %s1126_s2, 4  ;;  %s69_s27 = sshll.u32 %s1399_s8, 4  ;;  %s85_s23 = int_to_ptr.vmem [resolvable:$true] %s84_s23  ;;  %s70_s27 = int_to_ptr.hbm [resolvable:$true] %s69_s27 }
   0xd   :  { %90 = dma.hbm_to_vmem [thread:$0]  %s83_s20, 4096, %s85_s23, [#allocation8], %s1124_s21, %s1124_s21, %s1125_s22  }
   0xe   :  { %s1127_s28 = smov [#allocation2]   ;;  %s1128_s29 = smov [#allocation6]  }
   0xf   :  { %s41_s30 = sshll.u32 %s1127_s28, 4  ;;  %s71_s4 = sshll.u32 %s1128_s29, 4  ;;  %s42_s30 = int_to_ptr.vmem [resolvable:$true] %s41_s30  ;;  %s72_s4 = int_to_ptr.vmem [resolvable:$true] %s71_s4 }
  0x10   :  { %47 = dma.hbm_to_vmem [thread:$0]  %s40_s6, 4096, %s42_s30, [#allocation3], %s1124_s21, %s1124_s21, %s1125_s22  }
  0x11   :  { %s97_s1 = sshll.u32 %s1402_s11, 4  ;;  %s110_s2 = sshll.u32 %s1403_s12, 4  ;;  %s98_s1 = int_to_ptr.hbm [resolvable:$true] %s97_s1  ;;  %s111_s2 = int_to_ptr.hbm [resolvable:$true] %s110_s2 }
  0x12   :  { %77 = dma.hbm_to_vmem [thread:$0]  %s70_s27, 4096, %s72_s4, [#allocation5], %s1124_s21, %s1124_s21, %s1125_s22  }
  0x13   :  { %s1129_s23 = smov [#allocation9]   ;;  %s1130_s25 = smov [#allocation10]  }
  0x14   :  { %s99_s24 = sshll.u32 %s1129_s23, 4  ;;  %s112_s11 = sshll.u32 %s1130_s25, 4  ;;  %s100_s24 = int_to_ptr.vmem [resolvable:$true] %s99_s24  ;;  %s113_s11 = int_to_ptr.vmem [resolvable:$true] %s112_s11 }
  0x15   :  { %105 = dma.hbm_to_vmem [thread:$0]  %s98_s1, 4096, %s100_s24, [#allocation8], %s1124_s21, %s1124_s21, %s1125_s22  }
  0x16   :  { %118 = dma.hbm_to_vmem [thread:$0]  %s111_s2, 4096, %s113_s11, [#allocation11], %s1124_s21, %s1124_s21, %s1125_s22  }
  0x17   :  { %1115 = dma.done.wait [#allocation3], 4096  }
  0x18   :  { %1116 = vsyncadd [#allocation3], 4294963200 }
  0x19   :  { %1117 = dma.done.wait [#allocation5], 8192  }
  0x1a   :  { %1118 = vsyncadd [#allocation5], 4294959104 }
  0x1b   :  { %1119 = dma.done.wait [#allocation8], 8192  }
  0x1c   :  { %1120 = vsyncadd [#allocation8], 4294959104 }
  0x1d   :  { %1121 = dma.done.wait [#allocation11], 4096  }
  0x1e   :  { %1122 = vsyncadd [#allocation11], 4294963200  ;;  %v177_v0 = vld [vmem:[#allocation2 + $0x78] sm:$0xff]  ;;  %v176_v1 = vld [vmem:[#allocation2 + $0x70] sm:$0xff]  ;;  %s1414_s22 = sld [smem:[#allocation16_spill]]  ;;  %vm205_vm0 = vcmask 130048  }
  0x1f   :  { %182 = vmatpush.msra.mxu0 %v177_v0  ;;  %v175_v2 = vld [vmem:[#allocation2 + $0x68] sm:$0xff]  ;;  %v174_v3 = vld [vmem:[#allocation2 + $0x60] sm:$0xff]  ;;  %v173_v4 = vld [vmem:[#allocation2 + $0x58] sm:$0xff]  ;;  %s1415_s4 = sld [smem:[#allocation17_spill]]  ;;  %vm346_vm1 = vcmask 64512  }
  0x20   :  { %v172_v5 = vld [vmem:[#allocation2 + $0x50] sm:$0xff]  ;;  %v171_v6 = vld [vmem:[#allocation2 + $0x48] sm:$0xff]  ;;  %v170_v7 = vld [vmem:[#allocation2 + $0x40] sm:$0xff]  ;;  %s1416_s23 = sld [smem:[#allocation18_spill]] }
  0x21   :  { %183 = vmatpush.msra.mxu0 %v176_v1  ;;  %v169_v8 = vld [vmem:[#allocation2 + $0x38] sm:$0xff]  ;;  %v168_v9 = vld [vmem:[#allocation2 + $0x30] sm:$0xff]  ;;  %v167_v10 = vld [vmem:[#allocation2 + $0x28] sm:$0xff] }
  0x22   :  { %v166_v11 = vld [vmem:[#allocation2 + $0x20] sm:$0xff]  ;;  %v165_v12 = vld [vmem:[#allocation2 + $0x18] sm:$0xff]  ;;  %v164_v13 = vld [vmem:[#allocation2 + $0x10] sm:$0xff] }
  0x23   :  { %184 = vmatpush.msra.mxu0 %v175_v2  ;;  %v163_v14 = vld [vmem:[#allocation2 + $0x8] sm:$0xff]  ;;  %v162_v15 = vld [vmem:[#allocation2] sm:$0xff]  ;;  %v260_v18 = vld [vmem:[#allocation7 + $0x78] sm:$0xff] }
  0x24   :  { %v1265_v16 = vld [vmem:[%s1414_s22] sm:$0xff]  ;;  %v1271_v17 = vld [vmem:[%s1414_s22 + $0x8] sm:$0xff]  ;;  %v244_v19 = vld [vmem:[#allocation6 + $0x78] sm:$0xff]  ;;  %261 = vmatpush.msra.mxu2 %v260_v18 }
  0x25   :  { %185 = vmatpush.msra.mxu0 %v174_v3  ;;  %v259_v20 = vld [vmem:[#allocation7 + $0x70] sm:$0xff]  ;;  %281 = vmatpush.msra.mxu3 %v244_v19  ;;  %v258_v22 = vld [vmem:[#allocation7 + $0x68] sm:$0xff]  ;;  %v257_v24 = vld [vmem:[#allocation7 + $0x60] sm:$0xff] }
  0x26   :  { %v243_v21 = vld [vmem:[#allocation6 + $0x70] sm:$0xff]  ;;  %v242_v23 = vld [vmem:[#allocation6 + $0x68] sm:$0xff]  ;;  %262 = vmatpush.msra.mxu2 %v259_v20  ;;  %v241_v25 = vld [vmem:[#allocation6 + $0x60] sm:$0xff] }
  0x27   :  { %186 = vmatpush.msra.mxu0 %v173_v4  ;;  %282 = vmatpush.msra.mxu3 %v243_v21  ;;  %v256_v26 = vld [vmem:[#allocation7 + $0x58] sm:$0xff]  ;;  %v255_v28 = vld [vmem:[#allocation7 + $0x50] sm:$0xff]  ;;  %v254_v30 = vld [vmem:[#allocation7 + $0x48] sm:$0xff] }
  0x28   :  { %263 = vmatpush.msra.mxu2 %v258_v22  ;;  %v240_v27 = vld [vmem:[#allocation6 + $0x58] sm:$0xff]  ;;  %v239_v29 = vld [vmem:[#allocation6 + $0x50] sm:$0xff]  ;;  %v238_v31 = vld [vmem:[#allocation6 + $0x48] sm:$0xff] }
  0x29   :  { %187 = vmatpush.msra.mxu0 %v172_v5  ;;  %283 = vmatpush.msra.mxu3 %v242_v23  ;;  %v253_v32 = vld [vmem:[#allocation7 + $0x40] sm:$0xff]  ;;  %v252_v34 = vld [vmem:[#allocation7 + $0x38] sm:$0xff]  ;;  %v251_v36 = vld [vmem:[#allocation7 + $0x30] sm:$0xff] }
  0x2a   :  { %264 = vmatpush.msra.mxu2 %v257_v24  ;;  %v237_v33 = vld [vmem:[#allocation6 + $0x40] sm:$0xff]  ;;  %v236_v35 = vld [vmem:[#allocation6 + $0x38] sm:$0xff]  ;;  %v235_v37 = vld [vmem:[#allocation6 + $0x30] sm:$0xff] }
  0x2b   :  { %188 = vmatpush.msra.mxu0 %v171_v6  ;;  %284 = vmatpush.msra.mxu3 %v241_v25  ;;  %v250_v39 = vld [vmem:[#allocation7 + $0x28] sm:$0xff]  ;;  %v249_v41 = vld [vmem:[#allocation7 + $0x20] sm:$0xff]  ;;  %v248_v43 = vld [vmem:[#allocation7 + $0x18] sm:$0xff] }
  0x2c   :  { %265 = vmatpush.msra.mxu2 %v256_v26  ;;  %v234_v40 = vld [vmem:[#allocation6 + $0x28] sm:$0xff]  ;;  %v233_v42 = vld [vmem:[#allocation6 + $0x20] sm:$0xff]  ;;  %v232_v44 = vld [vmem:[#allocation6 + $0x18] sm:$0xff] }
  0x2d   :  { %189 = vmatpush.msra.mxu0 %v170_v7  ;;  %285 = vmatpush.msra.mxu3 %v240_v27  ;;  %v247_v45 = vld [vmem:[#allocation7 + $0x10] sm:$0xff]  ;;  %v947_v47 = vld [vmem:[%s1396_s5] ss:$0 sm:$0xff]  ;;  %v246_v50 = vld [vmem:[#allocation7 + $0x8] sm:$0xff] }
  0x2e   :  { %266 = vmatpush.msra.mxu2 %v255_v28  ;;  %v231_v46 = vld [vmem:[#allocation6 + $0x10] sm:$0xff]  ;;  %v1280_v48 = vld [vmem:[%s1394_s3] sm:$0xf]  ;;  %v230_v52 = vld [vmem:[#allocation6 + $0x8] sm:$0xff] }
  0x2f   :  { %190 = vmatpush.msra.mxu0 %v169_v8  ;;  %286 = vmatpush.msra.mxu3 %v239_v29  ;;  %v161_v53 = vunpack.c.l.bf16 %v1280_v48  ;;  %v245_v55 = vld [vmem:[#allocation7] sm:$0xff]  ;;  %v321_v58 = vld [vmem:[#allocation4 + $0x78] sm:$0xff]  ;;  %v320_v59 = vld [vmem:[#allocation4 + $0x70] sm:$0xff] }
  0x30   :  { %267 = vmatpush.msra.mxu2 %v254_v30  ;;  %v229_v56 = vld [vmem:[#allocation6] sm:$0xff]  ;;  %v319_v60 = vld [vmem:[#allocation4 + $0x68] sm:$0xff]  ;;  %v317_v62 = vld [vmem:[#allocation4 + $0x58] sm:$0xff] }
  0x31   :  { %191 = vmatpush.msra.mxu0 %v168_v9  ;;  %287 = vmatpush.msra.mxu3 %v238_v31  ;;  %v155_v57 = vld [vmem:[%s1415_s4] sm:$0xff]  ;;  %v316_v63 = vld [vmem:[#allocation4 + $0x50] sm:$0xff]  ;;  %v315_v0 = vld [vmem:[#allocation4 + $0x48] sm:$0xff] }
  0x32   :  { %268 = vmatpush.msra.mxu2 %v253_v32  ;;  %v318_v61 = vld [vmem:[#allocation4 + $0x60] sm:$0xff]  ;;  %v313_v2 = vld [vmem:[#allocation4 + $0x38] sm:$0xff]  ;;  %v312_v3 = vld [vmem:[#allocation4 + $0x30] sm:$0xff] }
  0x33   :  { %192 = vmatpush.msra.mxu0 %v167_v10  ;;  %288 = vmatpush.msra.mxu3 %v237_v33  ;;  %v314_v1 = vld [vmem:[#allocation4 + $0x40] sm:$0xff]  ;;  %v311_v4 = vld [vmem:[#allocation4 + $0x28] sm:$0xff]  ;;  %v309_v6 = vld [vmem:[#allocation4 + $0x18] sm:$0xff] }
  0x34   :  { %269 = vmatpush.msra.mxu2 %v252_v34  ;;  %v310_v5 = vld [vmem:[#allocation4 + $0x20] sm:$0xff]  ;;  %v308_v8 = vld [vmem:[#allocation4 + $0x10] sm:$0xff]  ;;  %v307_v9 = vld [vmem:[#allocation4 + $0x8] sm:$0xff] }
  0x35   :  { %193 = vmatpush.msra.mxu0 %v166_v11  ;;  %289 = vmatpush.msra.mxu3 %v236_v35  ;;  %v306_v10 = vld [vmem:[#allocation4] sm:$0xff]  ;;  %v391_v18 = vld [vmem:[#allocation9 + $0x78] sm:$0xff]  ;;  %v390_v19 = vld [vmem:[#allocation9 + $0x70] sm:$0xff] }
  0x36   :  { %270 = vmatpush.msra.mxu2 %v251_v36  ;;  %v389_v20 = vld [vmem:[#allocation9 + $0x68] sm:$0xff]  ;;  %v388_v21 = vld [vmem:[#allocation9 + $0x60] sm:$0xff]  ;;  %v387_v22 = vld [vmem:[#allocation9 + $0x58] sm:$0xff] }
  0x37   :  { %194 = vmatpush.msra.mxu0 %v165_v12  ;;  %290 = vmatpush.msra.mxu3 %v235_v37  ;;  %v948_v12 = vld [vmem:[%s1401_s10] ss:$0 sm:$0xff]  ;;  %v386_v23 = vld [vmem:[#allocation9 + $0x50] sm:$0xff]  ;;  %v385_v24 = vld [vmem:[#allocation9 + $0x48] sm:$0xff] }
  0x38   :  { %271 = vmatpush.msra.mxu2 %v250_v39  ;;  %v384_v25 = vld [vmem:[#allocation9 + $0x40] sm:$0xff]  ;;  %v383_v26 = vld [vmem:[#allocation9 + $0x38] sm:$0xff]  ;;  %v382_v27 = vld [vmem:[#allocation9 + $0x30] sm:$0xff] }
  0x39   :  { %195 = vmatpush.msra.mxu0 %v164_v13  ;;  %291 = vmatpush.msra.mxu3 %v234_v40  ;;  %v949_v28 = vld [vmem:[%s1398_s7] ss:$0 sm:$0xff]  ;;  %v381_v30 = vld [vmem:[#allocation9 + $0x28] sm:$0xff]  ;;  %v407_v35 = vld [vmem:[#allocation10 + $0x78] sm:$0xff] }
  0x3a   :  { %272 = vmatpush.msra.mxu2 %v249_v41  ;;  %v1298_v29 = vld [vmem:[%s1416_s23] sm:$0xff]   ;;  %v379_v36 = vld [vmem:[#allocation9 + $0x18] sm:$0xff]  ;;  %v406_v37 = vld [vmem:[#allocation10 + $0x70] sm:$0xff] }
  0x3b   :  { %196 = vmatpush.msra.mxu0 %v163_v14  ;;  %292 = vmatpush.msra.mxu3 %v233_v42  ;;  %v937_v32 = vunpack.c.l.bf16 %v1298_v29  ;;  %v380_v34 = vld [vmem:[#allocation9 + $0x20] sm:$0xff]  ;;  %v938_v39 = vunpack.c.h.bf16 %v1298_v29  ;;  %v403_v42 = vld [vmem:[#allocation10 + $0x58] sm:$0xff]  ;;  %v642_v48 = vld [vmem:[#allocation7 + $0xa8] sm:$0xff] }
  0x3c   :  { %273 = vmatpush.msra.mxu2 %v248_v43  ;;  %v404_v40 = vld [vmem:[#allocation10 + $0x60] sm:$0xff]  ;;  %v402_v43 = vld [vmem:[#allocation10 + $0x50] sm:$0xff] }
  0x3d   :  { %197 = vmatpush.msra.mxu0 %v162_v15  ;;  %293 = vmatpush.msra.mxu3 %v232_v44  ;;  %v401_v44 = vld [vmem:[#allocation10 + $0x48] sm:$0xff] }
  0x3e   :  { %198 = vmatmul.f32.vlgmr.msra.gmra.mxu0 %v1265_v16  ;;  %274 = vmatpush.msra.mxu2 %v247_v45  ;;  %v400_v45 = vld [vmem:[#allocation10 + $0x40] sm:$0xff] }
  0x3f   :  { %294 = vmatpush.msra.mxu3 %v231_v46  ;;  %v399_v46 = vld [vmem:[#allocation10 + $0x38] sm:$0xff] }
  0x40   :  { %275 = vmatpush.msra.mxu2 %v246_v50  ;;  %v378_v50 = vld [vmem:[#allocation9 + $0x10] sm:$0xff] }
  0x41   :  { %295 = vmatpush.msra.mxu3 %v230_v52  ;;  %v377_v52 = vld [vmem:[#allocation9 + $0x8] sm:$0xff] }
  0x42   :  { %276 = vmatpush.msra.mxu2 %v245_v55  ;;  %v376_v55 = vld [vmem:[#allocation9] sm:$0xff] }
  0x43   :  { %296 = vmatpush.msra.mxu3 %v229_v56  ;;  %v394_v56 = vld [vmem:[#allocation10 + $0x10] sm:$0xff] }
  0x44   :  { %297 = vmatmul.f32.vlgmr.msra.gmra.mxu3 %v155_v57  ;;  %v393_v57 = vld [vmem:[#allocation10 + $0x8] sm:$0xff] }
  0x45   :  { %431 = vmatpush.msrb.mxu3 %v391_v18 }
  0x46   :  { %201 = vmatmul.f32.gmra.mxu0 %v1271_v17 }
  0x47   :  { %432 = vmatpush.msrb.mxu3 %v390_v19 }
  0x49   :  { %433 = vmatpush.msrb.mxu3 %v389_v20 }
  0x4b   :  { %434 = vmatpush.msrb.mxu3 %v388_v21 }
  0x4d   :  { %435 = vmatpush.msrb.mxu3 %v387_v22 }
  0x4f   :  { %436 = vmatpush.msrb.mxu3 %v386_v23 }
  0x51   :  { %437 = vmatpush.msrb.mxu3 %v385_v24 }
  0x53   :  { %438 = vmatpush.msrb.mxu3 %v384_v25 }
  0x55   :  { %439 = vmatpush.msrb.mxu3 %v383_v26 }
  0x57   :  { %440 = vmatpush.msrb.mxu3 %v382_v27 }
  0x59   :  { %441 = vmatpush.msrb.mxu3 %v381_v30 }
  0x5b   :  { %442 = vmatpush.msrb.mxu3 %v380_v34  ;;  %v951_v34 = vld [vmem:[%s1408_s17] ss:$0 sm:$0xff] }
  0x5d   :  { %443 = vmatpush.msrb.mxu3 %v379_v36 }
  0x5f   :  { %444 = vmatpush.msrb.mxu3 %v378_v50  ;;  %v570_v50 = vld [vmem:[#allocation2 + $0xf8] sm:$0xff] }
  0x61   :  { %445 = vmatpush.msrb.mxu3 %v377_v52  ;;  %v568_v52 = vld [vmem:[#allocation2 + $0xe8] sm:$0xff] }
  0x63   :  { %446 = vmatpush.msrb.mxu3 %v376_v55  ;;  %v566_v55 = vld [vmem:[#allocation2 + $0xd8] sm:$0xff] }
  0x64   :  { %447 = vmatmul.f32.vlgmr.msrb.gmra.mxu3 %v1265_v16  ;;  %v629_v16 = vld [vmem:[#allocation6 + $0xc8] sm:$0xff] }
  0x6c   :  { %450 = vmatmul.f32.gmra.mxu3 %v1271_v17  ;;  %v624_v17 = vld [vmem:[#allocation6 + $0xa0] sm:$0xff] }
  0xbb   :  { %v199_v38 = vpop.f32.mrf.mxu0 }
  0xbc   :  { %v200_v54 = vadd.f32 %v947_v47, %v199_v38  ;;  %v405_v38 = vld [vmem:[#allocation10 + $0x68] sm:$0xff] }
  0xc3   :  { %v202_v49 = vpop.f32.mrf.mxu0 }
  0xc4   :  { %v203_v51 = vadd.f32 %v947_v47, %v202_v49  ;;  %v398_v47 = vld [vmem:[#allocation10 + $0x30] sm:$0xff]  ;;  %v397_v49 = vld [vmem:[#allocation10 + $0x28] sm:$0xff] }
  0xc6   :  { %223 = vmatpush.msra.mxu1 %v203_v51  ;;  %v396_v51 = vld [vmem:[#allocation10 + $0x20] sm:$0xff] }
  0xc7   :  { %v298_v11 = vpop.f32.mrf.mxu3 }
  0xc8   :  { %224 = vmatpush.msra.mxu1 %v200_v54  ;;  %v395_v54 = vld [vmem:[#allocation10 + $0x18] sm:$0xff] }
  0xc9   :  { %923 = vmatmul.msk.f32.vlgmr.msra.gmra.mxu1 %vm205_vm0, %v161_v53 }
  0xca   :  { %326 = vmatpush.msrb.mxu1 %v321_v58  ;;  %v392_v58 = vld [vmem:[#allocation10] sm:$0xff] }
  0xcc   :  { %327 = vmatpush.msrb.mxu1 %v320_v59  ;;  %v635_v59 = vld [vmem:[#allocation6 + $0xf8] sm:$0xff] }
  0xce   :  { %328 = vmatpush.msrb.mxu1 %v319_v60  ;;  %v634_v60 = vld [vmem:[#allocation6 + $0xf0] sm:$0xff] }
  0xd0   :  { %329 = vmatpush.msrb.mxu1 %v318_v61  ;;  %v633_v61 = vld [vmem:[#allocation6 + $0xe8] sm:$0xff] }
  0xd2   :  { %330 = vmatpush.msrb.mxu1 %v317_v62  ;;  %v632_v62 = vld [vmem:[#allocation6 + $0xe0] sm:$0xff] }
  0xd4   :  { %331 = vmatpush.msrb.mxu1 %v316_v63  ;;  %v631_v63 = vld [vmem:[#allocation6 + $0xd8] sm:$0xff] }
  0xd6   :  { %332 = vmatpush.msrb.mxu1 %v315_v0  ;;  %v630_v0 = vld [vmem:[#allocation6 + $0xd0] sm:$0xff] }
  0xd8   :  { %333 = vmatpush.msrb.mxu1 %v314_v1  ;;  %v628_v1 = vld [vmem:[#allocation6 + $0xc0] sm:$0xff] }
  0xda   :  { %334 = vmatpush.msrb.mxu1 %v313_v2  ;;  %v627_v2 = vld [vmem:[#allocation6 + $0xb8] sm:$0xff] }
  0xdc   :  { %335 = vmatpush.msrb.mxu1 %v312_v3  ;;  %v626_v3 = vld [vmem:[#allocation6 + $0xb0] sm:$0xff] }
  0xde   :  { %336 = vmatpush.msrb.mxu1 %v311_v4  ;;  %v625_v4 = vld [vmem:[#allocation6 + $0xa8] sm:$0xff] }
  0xe0   :  { %337 = vmatpush.msrb.mxu1 %v310_v5 }
  0xe2   :  { %338 = vmatpush.msrb.mxu1 %v309_v6  ;;  %v623_v6 = vld [vmem:[#allocation6 + $0x98] sm:$0xff] }
  0xe4   :  { %339 = vmatpush.msrb.mxu1 %v308_v8 }
  0xe6   :  { %340 = vmatpush.msrb.mxu1 %v307_v9  ;;  %v621_v9 = vld [vmem:[#allocation6 + $0x88] sm:$0xff] }
  0xe8   :  { %341 = vmatpush.msrb.mxu1 %v306_v10  ;;  %v620_v10 = vld [vmem:[#allocation6 + $0x80] sm:$0xff] }
  0xea   :  { %576 = vmatpush.msra.mxu1 %v570_v50 }
 0x146   :  { %v226_v7 = vpop.f32.mrf.mxu1 }
 0x147   :  { %277 = vmatmul.f32.vlgmr.msra.gmra.mxu2 %v226_v7  ;;  %v622_v7 = vld [vmem:[#allocation6 + $0x90] sm:$0xff] }
 0x1ca   :  { %v278_v13 = vpop.f32.mrf.mxu2 }
 0x1cb   :  { %v299_v14 = vadd.f32 %v298_v11, %v278_v13 }
 0x1cd   :  { %v305_v15 = vadd.f32 %v948_v12, %v299_v14 }
 0x1cf   :  { %342 = vmatmul.f32.vlgmr.msrb.gmra.mxu1 %v305_v15 }
 0x24c   :  { %v343_v31 = vpop.f32.mrf.mxu1 }
 0x24d   :  { %v1301_v33 = vadd.f32 %v949_v28, %v343_v31  ;;  %v950_v28 = vld [vmem:[%s1407_s16] ss:$0 sm:$0xff] }
 0x24f   :  { %522 = vadd.xlane.f32.xlu2 %v1301_v33  ;;  %368 = vmatpush.msrb.mxu0 %v1301_v33  ;;  %v525_v41 = vmul.f32 %v1301_v33, %v1301_v33 }
 0x250   :  { %924 = vmatmul.msk.f32.vlgmr.msrb.gmra.mxu0 %vm346_vm1, %v937_v32 }
 0x251   :  { %408 = vmatpush.msra.mxu0 %v407_v35 }
 0x253   :  { %409 = vmatpush.msra.mxu0 %v406_v37 }
 0x255   :  { %410 = vmatpush.msra.mxu0 %v405_v38  ;;  %v448_v38 = vpop.f32.mrf.mxu3 }
 0x257   :  { %526 = vadd.xlane.f32.xlu2 %v525_v41  ;;  %411 = vmatpush.msra.mxu0 %v404_v40 }
 0x258   :  { %925 = vmatmul.msk.f32.gmra.mxu0 %vm346_vm1, %v938_v39 }
 0x259   :  { %412 = vmatpush.msra.mxu0 %v403_v42 }
 0x25b   :  { %413 = vmatpush.msra.mxu0 %v402_v43 }
 0x25d   :  { %414 = vmatpush.msra.mxu0 %v401_v44  ;;  %v451_v43 = vpop.f32.mrf.mxu3 }
 0x25f   :  { %415 = vmatpush.msra.mxu0 %v400_v45 }
 0x261   :  { %416 = vmatpush.msra.mxu0 %v399_v46 }
 0x263   :  { %417 = vmatpush.msra.mxu0 %v398_v47 }
 0x265   :  { %418 = vmatpush.msra.mxu0 %v397_v49 }
 0x267   :  { %419 = vmatpush.msra.mxu0 %v396_v51  ;;  %v569_v51 = vld [vmem:[#allocation2 + $0xf0] sm:$0xff] }
 0x268   :  { %577 = vmatpush.msra.mxu1 %v569_v51 }
 0x269   :  { %420 = vmatpush.msra.mxu0 %v395_v54  ;;  %v567_v54 = vld [vmem:[#allocation2 + $0xe0] sm:$0xff] }
 0x26a   :  { %578 = vmatpush.msra.mxu1 %v568_v52 }
 0x26b   :  { %421 = vmatpush.msra.mxu0 %v394_v56  ;;  %v565_v56 = vld [vmem:[#allocation2 + $0xd0] sm:$0xff] }
 0x26c   :  { %579 = vmatpush.msra.mxu1 %v567_v54 }
 0x26d   :  { %422 = vmatpush.msra.mxu0 %v393_v57  ;;  %v564_v57 = vld [vmem:[#allocation2 + $0xc8] sm:$0xff] }
 0x26e   :  { %580 = vmatpush.msra.mxu1 %v566_v55  ;;  %v652_v55 = vld [vmem:[#allocation7 + $0xf8] sm:$0xff] }
 0x26f   :  { %423 = vmatpush.msra.mxu0 %v392_v58  ;;  %v563_v58 = vld [vmem:[#allocation2 + $0xc0] sm:$0xff] }
 0x270   :  { %581 = vmatpush.msra.mxu1 %v565_v56  ;;  %v651_v56 = vld [vmem:[#allocation7 + $0xf0] sm:$0xff] }
 0x271   :  { %673 = vmatpush.msrb.mxu0 %v635_v59  ;;  %v562_v59 = vld [vmem:[#allocation2 + $0xb8] sm:$0xff] }
 0x272   :  { %582 = vmatpush.msra.mxu1 %v564_v57  ;;  %v650_v57 = vld [vmem:[#allocation7 + $0xe8] sm:$0xff] }
 0x273   :  { %674 = vmatpush.msrb.mxu0 %v634_v60  ;;  %v561_v60 = vld [vmem:[#allocation2 + $0xb0] sm:$0xff] }
 0x274   :  { %583 = vmatpush.msra.mxu1 %v563_v58  ;;  %v649_v58 = vld [vmem:[#allocation7 + $0xe0] sm:$0xff] }
 0x275   :  { %675 = vmatpush.msrb.mxu0 %v633_v61  ;;  %v560_v61 = vld [vmem:[#allocation2 + $0xa8] sm:$0xff] }
 0x276   :  { %584 = vmatpush.msra.mxu1 %v562_v59  ;;  %v648_v59 = vld [vmem:[#allocation7 + $0xd8] sm:$0xff] }
 0x277   :  { %676 = vmatpush.msrb.mxu0 %v632_v62 }
 0x278   :  { %585 = vmatpush.msra.mxu1 %v561_v60  ;;  %v647_v60 = vld [vmem:[#allocation7 + $0xd0] sm:$0xff] }
 0x279   :  { %677 = vmatpush.msrb.mxu0 %v631_v63  ;;  %v559_v63 = vld [vmem:[#allocation2 + $0xa0] sm:$0xff] }
 0x27a   :  { %586 = vmatpush.msra.mxu1 %v560_v61  ;;  %v646_v61 = vld [vmem:[#allocation7 + $0xc8] sm:$0xff] }
 0x27b   :  { %678 = vmatpush.msrb.mxu0 %v630_v0  ;;  %v558_v0 = vld [vmem:[#allocation2 + $0x98] sm:$0xff] }
 0x27c   :  { %587 = vmatpush.msra.mxu1 %v559_v63  ;;  %v644_v63 = vld [vmem:[#allocation7 + $0xb8] sm:$0xff] }
 0x27d   :  { %679 = vmatpush.msrb.mxu0 %v629_v16 }
 0x27e   :  { %588 = vmatpush.msra.mxu1 %v558_v0  ;;  %v643_v0 = vld [vmem:[#allocation7 + $0xb0] sm:$0xff] }
 0x27f   :  { %680 = vmatpush.msrb.mxu0 %v628_v1  ;;  %v557_v1 = vld [vmem:[#allocation2 + $0x90] sm:$0xff] }
 0x280   :  { %589 = vmatpush.msra.mxu1 %v557_v1  ;;  %v639_v1 = vld [vmem:[#allocation7 + $0x90] sm:$0xff] }
 0x281   :  { %681 = vmatpush.msrb.mxu0 %v627_v2  ;;  %v556_v2 = vld [vmem:[#allocation2 + $0x88] sm:$0xff] }
 0x282   :  { %590 = vmatpush.msra.mxu1 %v556_v2  ;;  %v638_v2 = vld [vmem:[#allocation7 + $0x88] sm:$0xff] }
 0x283   :  { %682 = vmatpush.msrb.mxu0 %v626_v3  ;;  %v555_v3 = vld [vmem:[#allocation2 + $0x80] sm:$0xff] }
 0x284   :  { %591 = vmatpush.msra.mxu1 %v555_v3  ;;  %v637_v3 = vld [vmem:[#allocation7 + $0x80] sm:$0xff] }
 0x285   :  { %683 = vmatpush.msrb.mxu0 %v625_v4 }
 0x287   :  { %684 = vmatpush.msrb.mxu0 %v624_v17 }
 0x289   :  { %685 = vmatpush.msrb.mxu0 %v623_v6 }
 0x28b   :  { %686 = vmatpush.msrb.mxu0 %v622_v7 }
 0x28d   :  { %687 = vmatpush.msrb.mxu0 %v621_v9 }
 0x28f   :  { %688 = vmatpush.msrb.mxu0 %v620_v10 }
 0x2c2   :  { %v523_v5 = vpop.xlane.xlu2 %522 }
 0x2c3   :  { %v524_v8 = vmul.f32 0.03125, %v523_v5 }
 0x2c5   :  { %v529_v12 = vmul.f32 %v524_v8, %v524_v8  ;;  %v532_v27 = vsub.f32 %v1301_v33, %v524_v8  ;;  %v952_v33 = vld [vmem:[%s1404_s13] ss:$0 sm:$0xff] }
 0x2ca   :  { %v527_v11 = vpop.xlane.xlu2 %526 }
 0x2cb   :  { %v528_v13 = vmul.f32 0.03125, %v527_v11 }
 0x2cd   :  { %v530_v14 = vsub.f32 %v528_v13, %v529_v12  ;;  %v370_v15 = vpop.f32.mrf.mxu0 }
 0x2ce   :  { %424 = vmatmul.f32.vlgmr.msra.gmra.mxu0 %v370_v15 }
 0x2cf   :  { %v531_v18 = vmax.f32 %v530_v14, 0.0 }
 0x2d1   :  { %v533_v19 = vadd.f32 1e-05, %v531_v18 }
 0x2d3   :  { %961 = vrsqrt.f32 %v533_v19  ;;  %vm540_vm3 = vweird.f32 %v533_v19 }
 0x2d5   :  { %v373_v20 = vpop.f32.mrf.mxu0 }
 0x2d6   :  { %427 = vmatmul.f32.gmra.mxu0 %v373_v20 }
 0x2d9   :  { %v962_v21 = vpop.eup %961 }
 0x2da   :  { %v535_v22 = vmul.f32 %v962_v21, %v533_v19  ;;  %vm541_vm2 = vweird.f32 %v962_v21 }
 0x2db   :  { %vm542_vm4 = vmor %vm540_vm3, %vm541_vm2 }
 0x2dc   :  { %v536_v23 = vmul.f32 %v962_v21, %v535_v22 }
 0x2de   :  { %v537_v24 = vmul.f32 0.5, %v536_v23 }
 0x2e0   :  { %v538_v25 = vsub.f32 1.5, %v537_v24 }
 0x2e2   :  { %v539_v26 = vmul.f32 %v962_v21, %v538_v25 }
 0x2e4   :  { %v543_v30 = vsel %vm542_vm4, %v962_v21, %v539_v26 }
 0x2e5   :  { %v544_v31 = vmul.f32 %v543_v30, %v532_v27 }
 0x2e7   :  { %v548_v35 = vmul.f32 %v950_v28, %v544_v31  ;;  %v953_v28 = vld [vmem:[%s1405_s14] ss:$0 sm:$0xff] }
 0x2e9   :  { %v552_v36 = vadd.f32 %v951_v34, %v548_v35  ;;  %v954_v35 = vld [vmem:[%s1406_s15] ss:$0 sm:$0xff] }
 0x2eb   :  { %v553_v37 = vmax.f32 %v552_v36, 0.0 }
 0x2ed   :  { %689 = vmatmul.f32.vlgmr.msrb.gmra.mxu0 %v553_v37 }
 0x34b   :  { %v425_v40 = vpop.f32.mrf.mxu0 }
 0x34c   :  { %v449_v41 = vadd.f32 %v448_v38, %v425_v40 }
 0x34e   :  { %v1326_v42 = vadd.f32 %v952_v33, %v449_v41 }
 0x350   :  { %462 = vadd.xlane.f32.xlu0 %v1326_v42  ;;  %v468_v47 = vmul.f32 %v1326_v42, %v1326_v42 }
 0x353   :  { %v428_v44 = vpop.f32.mrf.mxu0 }
 0x354   :  { %v452_v45 = vadd.f32 %v451_v43, %v428_v44 }
 0x356   :  { %v1329_v46 = vadd.f32 %v952_v33, %v452_v45 }
 0x358   :  { %470 = vadd.xlane.f32.xlu0 %v468_v47  ;;  %464 = vadd.xlane.f32.xlu1 %v1329_v46  ;;  %v469_v49 = vmul.f32 %v1329_v46, %v1329_v46 }
 0x360   :  { %472 = vadd.xlane.f32.xlu1 %v469_v49 }
 0x3c3   :  { %v463_v62 = vpop.xlane.xlu0 %462 }
 0x3c4   :  { %v466_v16 = vmul.f32 0.03125, %v463_v62  ;;  %v645_v62 = vld [vmem:[#allocation7 + $0xc0] sm:$0xff] }
 0x3c6   :  { %v476_v17 = vmul.f32 %v466_v16, %v466_v16  ;;  %v482_v27 = vsub.f32 %v1326_v42, %v466_v16  ;;  %v640_v16 = vld [vmem:[#allocation7 + $0x98] sm:$0xff] }
 0x3cb   :  { %v471_v4 = vpop.xlane.xlu0 %470  ;;  %v465_v5 = vpop.xlane.xlu1 %464 }
 0x3cc   :  { %v474_v6 = vmul.f32 0.03125, %v471_v4  ;;  %v467_v9 = vmul.f32 0.03125, %v465_v5  ;;  %v780_v4 = vld [vmem:[#allocation9 + $0xf8] sm:$0xff]  ;;  %v779_v5 = vld [vmem:[#allocation9 + $0xf0] sm:$0xff] }
 0x3ce   :  { %v478_v7 = vsub.f32 %v474_v6, %v476_v17  ;;  %v477_v12 = vmul.f32 %v467_v9, %v467_v9  ;;  %v483_v41 = vsub.f32 %v1329_v46, %v467_v9  ;;  %v955_v46 = vld [vmem:[%s1396_s5 + $0x1] ss:$0 sm:$0xff]  ;;  %v778_v17 = vld [vmem:[#allocation9 + $0xe8] sm:$0xff] }
 0x3cf   :  { %v777_v6 = vld [vmem:[#allocation9 + $0xe0] sm:$0xff]  ;;  %v774_v9 = vld [vmem:[#allocation9 + $0xc8] sm:$0xff] }
 0x3d0   :  { %v480_v8 = vmax.f32 %v478_v7, 0.0  ;;  %v776_v7 = vld [vmem:[#allocation9 + $0xd8] sm:$0xff] }
 0x3d2   :  { %v484_v10 = vadd.f32 1e-05, %v480_v8  ;;  %v775_v8 = vld [vmem:[#allocation9 + $0xd0] sm:$0xff] }
 0x3d3   :  { %v473_v11 = vpop.xlane.xlu1 %472 }
 0x3d4   :  { %963 = vrsqrt.f32 %v484_v10  ;;  %v475_v13 = vmul.f32 0.03125, %v473_v11  ;;  %vm492_vm6 = vweird.f32 %v484_v10  ;;  %v772_v11 = vld [vmem:[#allocation9 + $0xb8] sm:$0xff] }
 0x3d6   :  { %v479_v14 = vsub.f32 %v475_v13, %v477_v12  ;;  %v771_v12 = vld [vmem:[#allocation9 + $0xb0] sm:$0xff]  ;;  %v770_v13 = vld [vmem:[#allocation9 + $0xa8] sm:$0xff] }
 0x3d8   :  { %v481_v15 = vmax.f32 %v479_v14, 0.0  ;;  %v769_v14 = vld [vmem:[#allocation9 + $0xa0] sm:$0xff] }
 0x3da   :  { %v964_v18 = vpop.eup %963  ;;  %v485_v19 = vadd.f32 1e-05, %v481_v15  ;;  %v768_v15 = vld [vmem:[#allocation9 + $0x98] sm:$0xff] }
 0x3db   :  { %v487_v20 = vmul.f32 %v964_v18, %v484_v10  ;;  %vm493_vm5 = vweird.f32 %v964_v18  ;;  %v773_v10 = vld [vmem:[#allocation9 + $0xc0] sm:$0xff] }
 0x3dc   :  { %965 = vrsqrt.f32 %v485_v19  ;;  %vm494_vm7 = vmor %vm492_vm6, %vm493_vm5  ;;  %vm502_vm9 = vweird.f32 %v485_v19 }
 0x3dd   :  { %v488_v21 = vmul.f32 %v964_v18, %v487_v20  ;;  %v765_v20 = vld [vmem:[#allocation9 + $0x80] sm:$0xff] }
 0x3df   :  { %v489_v22 = vmul.f32 0.5, %v488_v21  ;;  %v715_v21 = vld [vmem:[#allocation4 + $0xf8] sm:$0xff] }
 0x3e0   :  { %721 = vmatpush.msra.mxu3 %v715_v21 }
 0x3e1   :  { %v490_v23 = vsub.f32 1.5, %v489_v22  ;;  %v714_v22 = vld [vmem:[#allocation4 + $0xf0] sm:$0xff] }
 0x3e2   :  { %v966_v24 = vpop.eup %965  ;;  %722 = vmatpush.msra.mxu3 %v714_v22 }
 0x3e3   :  { %v491_v25 = vmul.f32 %v964_v18, %v490_v23  ;;  %v497_v26 = vmul.f32 %v966_v24, %v485_v19  ;;  %vm503_vm8 = vweird.f32 %v966_v24  ;;  %v766_v19 = vld [vmem:[#allocation9 + $0x88] sm:$0xff] }
 0x3e4   :  { %vm504_vm10 = vmor %vm502_vm9, %vm503_vm8  ;;  %v713_v23 = vld [vmem:[#allocation4 + $0xe8] sm:$0xff] }
 0x3e5   :  { %v495_v30 = vsel %vm494_vm7, %v964_v18, %v491_v25  ;;  %v498_v31 = vmul.f32 %v966_v24, %v497_v26  ;;  %v767_v18 = vld [vmem:[#allocation9 + $0x90] sm:$0xff]  ;;  %723 = vmatpush.msra.mxu3 %v713_v23  ;;  %v711_v25 = vld [vmem:[#allocation4 + $0xd8] sm:$0xff] }
 0x3e6   :  { %v506_v34 = vmul.f32 %v495_v30, %v482_v27  ;;  %v710_v26 = vld [vmem:[#allocation4 + $0xd0] sm:$0xff]  ;;  %v709_v27 = vld [vmem:[#allocation4 + $0xc8] sm:$0xff]  ;;  %v707_v30 = vld [vmem:[#allocation4 + $0xb8] sm:$0xff] }
 0x3e7   :  { %v499_v36 = vmul.f32 0.5, %v498_v31 }
 0x3e8   :  { %v511_v37 = vmul.f32 %v953_v28, %v506_v34  ;;  %v706_v34 = vld [vmem:[#allocation4 + $0xb0] sm:$0xff] }
 0x3e9   :  { %v500_v38 = vsub.f32 1.5, %v499_v36  ;;  %v704_v36 = vld [vmem:[#allocation4 + $0xa0] sm:$0xff] }
 0x3ea   :  { %v1343_v33 = vadd.f32 %v954_v35, %v511_v37  ;;  %v703_v37 = vld [vmem:[#allocation4 + $0x98] sm:$0xff] }
 0x3eb   :  { %v501_v40 = vmul.f32 %v966_v24, %v500_v38  ;;  %v702_v38 = vld [vmem:[#allocation4 + $0x90] sm:$0xff] }
 0x3ec   :  { %v518_v42 = vmax.f32 %v1343_v33, 0.0  ;;  %v797_v33 = vld [vmem:[#allocation10 + $0xf8] sm:$0xff] }
 0x3ed   :  { %v505_v43 = vsel %vm504_vm10, %v966_v24, %v501_v40  ;;  %v712_v24 = vld [vmem:[#allocation4 + $0xe0] sm:$0xff]  ;;  %v701_v40 = vld [vmem:[#allocation4 + $0x88] sm:$0xff]  ;;  %798 = vmatpush.msrb.mxu1 %v797_v33 }
 0x3ee   :  { %592 = vmatmul.f32.vlgmr.msra.gmra.mxu1 %v518_v42  ;;  %v507_v44 = vmul.f32 %v505_v43, %v483_v41  ;;  %724 = vmatpush.msra.mxu3 %v712_v24  ;;  %v700_v41 = vld [vmem:[#allocation4 + $0x80] sm:$0xff] }
 0x3ef   :  { %v956_v43 = vld [vmem:[%s1401_s10 + $0x1] ss:$0 sm:$0xff] }
 0x3f0   :  { %v512_v45 = vmul.f32 %v953_v28, %v507_v44  ;;  %725 = vmatpush.msra.mxu3 %v711_v25  ;;  %v708_v28 = vld [vmem:[#allocation4 + $0xc0] sm:$0xff]  ;;  %v690_v44 = vpop.f32.mrf.mxu0 }
 0x3f2   :  { %v1349_v47 = vadd.f32 %v954_v35, %v512_v45  ;;  %726 = vmatpush.msra.mxu3 %v710_v26  ;;  %v705_v35 = vld [vmem:[#allocation4 + $0xa8] sm:$0xff] }
 0x3f4   :  { %v519_v49 = vmax.f32 %v1349_v47, 0.0  ;;  %727 = vmatpush.msra.mxu3 %v709_v27  ;;  %v795_v47 = vld [vmem:[#allocation10 + $0xe8] sm:$0xff] }
 0x3f6   :  { %595 = vmatmul.f32.gmra.mxu1 %v519_v49  ;;  %728 = vmatpush.msra.mxu3 %v708_v28 }
 0x3f8   :  { %729 = vmatpush.msra.mxu3 %v707_v30 }
 0x3fa   :  { %730 = vmatpush.msra.mxu3 %v706_v34 }
 0x3fc   :  { %731 = vmatpush.msra.mxu3 %v705_v35 }
 0x3fe   :  { %732 = vmatpush.msra.mxu3 %v704_v36 }
 0x400   :  { %733 = vmatpush.msra.mxu3 %v703_v37 }
 0x402   :  { %734 = vmatpush.msra.mxu3 %v702_v38  ;;  %v959_v38 = vld [vmem:[%s1405_s14 + $0x1] ss:$0 sm:$0xff] }
 0x404   :  { %735 = vmatpush.msra.mxu3 %v701_v40 }
 0x406   :  { %736 = vmatpush.msra.mxu3 %v700_v41 }
 0x46b   :  { %v593_v50 = vpop.f32.mrf.mxu1 }
 0x46c   :  { %v594_v54 = vadd.f32 %v955_v46, %v593_v50 }
 0x473   :  { %v596_v51 = vpop.f32.mrf.mxu1 }
 0x474   :  { %v597_v52 = vadd.f32 %v955_v46, %v596_v51  ;;  %v793_v51 = vld [vmem:[#allocation10 + $0xd8] sm:$0xff] }
 0x476   :  { %613 = vmatpush.msrb.mxu2 %v597_v52  ;;  %v792_v52 = vld [vmem:[#allocation10 + $0xd0] sm:$0xff] }
 0x478   :  { %614 = vmatpush.msrb.mxu2 %v594_v54  ;;  %v791_v54 = vld [vmem:[#allocation10 + $0xc8] sm:$0xff] }
 0x479   :  { %927 = vmatmul.msk.f32.vlgmr.msrb.gmra.mxu2 %vm205_vm0, %v161_v53  ;;  %v641_v53 = vld [vmem:[#allocation7 + $0xa0] sm:$0xff] }
 0x47a   :  { %653 = vmatpush.msra.mxu2 %v652_v55  ;;  %v790_v55 = vld [vmem:[#allocation10 + $0xc0] sm:$0xff] }
 0x47c   :  { %654 = vmatpush.msra.mxu2 %v651_v56  ;;  %v789_v56 = vld [vmem:[#allocation10 + $0xb8] sm:$0xff] }
 0x47e   :  { %655 = vmatpush.msra.mxu2 %v650_v57  ;;  %v788_v57 = vld [vmem:[#allocation10 + $0xb0] sm:$0xff] }
 0x480   :  { %656 = vmatpush.msra.mxu2 %v649_v58  ;;  %v957_v58 = vld [vmem:[%s1398_s7 + $0x1] ss:$0 sm:$0xff] }
 0x482   :  { %657 = vmatpush.msra.mxu2 %v648_v59  ;;  %v787_v59 = vld [vmem:[#allocation10 + $0xa8] sm:$0xff] }
 0x484   :  { %658 = vmatpush.msra.mxu2 %v647_v60 }
 0x486   :  { %659 = vmatpush.msra.mxu2 %v646_v61  ;;  %v786_v61 = vld [vmem:[#allocation10 + $0xa0] sm:$0xff] }
 0x488   :  { %660 = vmatpush.msra.mxu2 %v645_v62 }
 0x48a   :  { %661 = vmatpush.msra.mxu2 %v644_v63  ;;  %v785_v63 = vld [vmem:[#allocation10 + $0x98] sm:$0xff] }
 0x48c   :  { %662 = vmatpush.msra.mxu2 %v643_v0  ;;  %v784_v0 = vld [vmem:[#allocation10 + $0x90] sm:$0xff] }
 0x48e   :  { %663 = vmatpush.msra.mxu2 %v642_v48  ;;  %v783_v48 = vld [vmem:[#allocation10 + $0x88] sm:$0xff] }
 0x490   :  { %664 = vmatpush.msra.mxu2 %v641_v53  ;;  %v782_v53 = vld [vmem:[#allocation10 + $0x80] sm:$0xff] }
 0x492   :  { %665 = vmatpush.msra.mxu2 %v640_v16 }
 0x494   :  { %666 = vmatpush.msra.mxu2 %v639_v1 }
 0x496   :  { %667 = vmatpush.msra.mxu2 %v638_v2 }
 0x498   :  { %668 = vmatpush.msra.mxu2 %v637_v3 }
 0x49a   :  { %821 = vmatpush.msrb.mxu2 %v780_v4 }
 0x49c   :  { %822 = vmatpush.msrb.mxu2 %v779_v5 }
 0x49e   :  { %823 = vmatpush.msrb.mxu2 %v778_v17 }
 0x4a0   :  { %824 = vmatpush.msrb.mxu2 %v777_v6 }
 0x4a2   :  { %825 = vmatpush.msrb.mxu2 %v776_v7 }
 0x4a4   :  { %826 = vmatpush.msrb.mxu2 %v775_v8 }
 0x4a6   :  { %827 = vmatpush.msrb.mxu2 %v774_v9 }
 0x4a8   :  { %828 = vmatpush.msrb.mxu2 %v773_v10 }
 0x4aa   :  { %829 = vmatpush.msrb.mxu2 %v772_v11 }
 0x4ac   :  { %830 = vmatpush.msrb.mxu2 %v771_v12 }
 0x4ae   :  { %831 = vmatpush.msrb.mxu2 %v770_v13 }
 0x4b0   :  { %832 = vmatpush.msrb.mxu2 %v769_v14 }
 0x4b2   :  { %833 = vmatpush.msrb.mxu2 %v768_v15 }
 0x4b4   :  { %834 = vmatpush.msrb.mxu2 %v767_v18 }
 0x4b6   :  { %835 = vmatpush.msrb.mxu2 %v766_v19 }
 0x4b8   :  { %836 = vmatpush.msrb.mxu2 %v765_v20 }
 0x4fc   :  { %v616_v31 = vpop.f32.mrf.mxu2 }
 0x4fd   :  { %669 = vmatmul.f32.vlgmr.msra.gmra.mxu2 %v616_v31 }
 0x505   :  { %837 = vmatmul.f32.vlgmr.msrb.gmra.mxu2 %v518_v42  ;;  %v796_v42 = vld [vmem:[#allocation10 + $0xf0] sm:$0xff] }
 0x506   :  { %799 = vmatpush.msrb.mxu1 %v796_v42 }
 0x508   :  { %800 = vmatpush.msrb.mxu1 %v795_v47 }
 0x50d   :  { %840 = vmatmul.f32.gmra.mxu2 %v519_v49  ;;  %v794_v49 = vld [vmem:[#allocation10 + $0xe0] sm:$0xff] }
 0x50e   :  { %801 = vmatpush.msrb.mxu1 %v794_v49 }
 0x510   :  { %802 = vmatpush.msrb.mxu1 %v793_v51 }
 0x512   :  { %803 = vmatpush.msrb.mxu1 %v792_v52 }
 0x514   :  { %804 = vmatpush.msrb.mxu1 %v791_v54 }
 0x516   :  { %805 = vmatpush.msrb.mxu1 %v790_v55 }
 0x518   :  { %806 = vmatpush.msrb.mxu1 %v789_v56 }
 0x51a   :  { %807 = vmatpush.msrb.mxu1 %v788_v57 }
 0x51c   :  { %808 = vmatpush.msrb.mxu1 %v787_v59 }
 0x51e   :  { %809 = vmatpush.msrb.mxu1 %v786_v61 }
 0x520   :  { %810 = vmatpush.msrb.mxu1 %v785_v63 }
 0x522   :  { %811 = vmatpush.msrb.mxu1 %v784_v0 }
 0x524   :  { %812 = vmatpush.msrb.mxu1 %v783_v48 }
 0x526   :  { %813 = vmatpush.msrb.mxu1 %v782_v53 }
 0x580   :  { %v670_v45 = vpop.f32.mrf.mxu2 }
 0x581   :  { %v691_v50 = vadd.f32 %v690_v44, %v670_v45 }
 0x583   :  { %v698_v46 = vadd.f32 %v956_v43, %v691_v50  ;;  %v960_v43 = vld [vmem:[%s1406_s15 + $0x1] ss:$0 sm:$0xff] }
 0x585   :  { %737 = vmatmul.f32.vlgmr.msra.gmra.mxu3 %v698_v46 }
 0x588   :  { %v838_v2 = vpop.f32.mrf.mxu2 }
 0x590   :  { %v841_v29 = vpop.f32.mrf.mxu2 }
 0x608   :  { %v738_v60 = vpop.f32.mrf.mxu3 }
 0x609   :  { %v739_v62 = vadd.f32 %v957_v58, %v738_v60 }
 0x60b   :  { %756 = vmatpush.msrb.mxu3 %v739_v62 }
 0x60c   :  { %930 = vmatmul.msk.f32.vlgmr.msrb.gmra.mxu3 %vm346_vm1, %v937_v32  ;;  %v958_v32 = vld [vmem:[%s1404_s13 + $0x1] ss:$0 sm:$0xff] }
 0x614   :  { %931 = vmatmul.msk.f32.gmra.mxu3 %vm346_vm1, %v938_v39 }
 0x68f   :  { %v758_v16 = vpop.f32.mrf.mxu3 }
 0x690   :  { %814 = vmatmul.f32.vlgmr.msrb.gmra.mxu1 %v758_v16 }
 0x697   :  { %v761_v1 = vpop.f32.mrf.mxu3 }
 0x698   :  { %817 = vmatmul.f32.gmra.mxu1 %v761_v1 }
 0x70d   :  { %v815_v3 = vpop.f32.mrf.mxu1 }
 0x70e   :  { %v839_v4 = vadd.f32 %v838_v2, %v815_v3 }
 0x710   :  { %v849_v5 = vadd.f32 %v958_v32, %v839_v4 }
 0x712   :  { %855 = vadd.xlane.f32.xlu0 %v849_v5  ;;  %v861_v17 = vmul.f32 %v849_v5, %v849_v5 }
 0x714   :  { %863 = vadd.xlane.f32.xlu2 %v861_v17 }
 0x715   :  { %v818_v6 = vpop.f32.mrf.mxu1 }
 0x716   :  { %v842_v39 = vadd.f32 %v841_v29, %v818_v6 }
 0x718   :  { %v850_v7 = vadd.f32 %v958_v32, %v842_v39 }
 0x71a   :  { %857 = vadd.xlane.f32.xlu1 %v850_v7  ;;  %v862_v8 = vmul.f32 %v850_v7, %v850_v7 }
 0x71c   :  { %865 = vadd.xlane.f32.xlu0 %v862_v8 }
 0x785   :  { %v856_v9 = vpop.xlane.xlu0 %855 }
 0x786   :  { %v859_v10 = vmul.f32 0.03125, %v856_v9 }
 0x787   :  { %v864_v11 = vpop.xlane.xlu2 %863 }
 0x788   :  { %v869_v12 = vmul.f32 %v859_v10, %v859_v10  ;;  %v867_v13 = vmul.f32 0.03125, %v864_v11  ;;  %v875_v37 = vsub.f32 %v849_v5, %v859_v10 }
 0x78a   :  { %v871_v14 = vsub.f32 %v867_v13, %v869_v12 }
 0x78c   :  { %v873_v15 = vmax.f32 %v871_v14, 0.0 }
 0x78d   :  { %v858_v18 = vpop.xlane.xlu1 %857 }
 0x78e   :  { %v877_v19 = vadd.f32 1e-05, %v873_v15  ;;  %v860_v20 = vmul.f32 0.03125, %v858_v18 }
 0x78f   :  { %v866_v21 = vpop.xlane.xlu0 %865 }
 0x790   :  { %967 = vrsqrt.f32 %v877_v19  ;;  %v870_v22 = vmul.f32 %v860_v20, %v860_v20  ;;  %v868_v23 = vmul.f32 0.03125, %v866_v21  ;;  %vm885_vm12 = vweird.f32 %v877_v19 }
 0x791   :  { %v876_v51 = vsub.f32 %v850_v7, %v860_v20 }
 0x792   :  { %v872_v24 = vsub.f32 %v868_v23, %v870_v22 }
 0x794   :  { %v874_v25 = vmax.f32 %v872_v24, 0.0 }
 0x796   :  { %v968_v26 = vpop.eup %967  ;;  %v878_v28 = vadd.f32 1e-05, %v874_v25 }
 0x797   :  { %v880_v27 = vmul.f32 %v968_v26, %v877_v19  ;;  %vm886_vm11 = vweird.f32 %v968_v26 }
 0x798   :  { %969 = vrsqrt.f32 %v878_v28  ;;  %vm887_vm13 = vmor %vm885_vm12, %vm886_vm11  ;;  %vm895_vm15 = vweird.f32 %v878_v28 }
 0x799   :  { %v881_v30 = vmul.f32 %v968_v26, %v880_v27 }
 0x79b   :  { %v882_v31 = vmul.f32 0.5, %v881_v30 }
 0x79d   :  { %v883_v34 = vsub.f32 1.5, %v882_v31 }
 0x79e   :  { %v970_v35 = vpop.eup %969 }
 0x79f   :  { %v884_v36 = vmul.f32 %v968_v26, %v883_v34  ;;  %v890_v40 = vmul.f32 %v970_v35, %v878_v28  ;;  %vm896_vm14 = vweird.f32 %v970_v35 }
 0x7a0   :  { %vm897_vm0 = vmor %vm895_vm15, %vm896_vm14 }
 0x7a1   :  { %v888_v41 = vsel %vm887_vm13, %v968_v26, %v884_v36  ;;  %v891_v45 = vmul.f32 %v970_v35, %v890_v40 }
 0x7a2   :  { %v899_v44 = vmul.f32 %v888_v41, %v875_v37 }
 0x7a3   :  { %v892_v46 = vmul.f32 0.5, %v891_v45 }
 0x7a4   :  { %v904_v50 = vmul.f32 %v959_v38, %v899_v44 }
 0x7a5   :  { %v893_v42 = vsub.f32 1.5, %v892_v46 }
 0x7a6   :  { %v909_v33 = vadd.f32 %v960_v43, %v904_v50 }
 0x7a7   :  { %v894_v49 = vmul.f32 %v970_v35, %v893_v42 }
 0x7a8   :  { %v911_v47 = vmax.f32 %v909_v33, 0.0 }
 0x7a9   :  { %v898_v52 = vsel %vm897_vm0, %v970_v35, %v894_v49 }
 0x7aa   :  { %913 = vst [vmem:[%s1409_s18] sm:$0xff] %v911_v47  ;;  %v900_v54 = vmul.f32 %v898_v52, %v876_v51 }
 0x7ac   :  { %v905_v55 = vmul.f32 %v959_v38, %v900_v54 }
 0x7ae   :  { %v910_v56 = vadd.f32 %v960_v43, %v905_v55 }
 0x7b0   :  { %v912_v57 = vmax.f32 %v910_v56, 0.0 }
 0x7b2   :  { %914 = vst [vmem:[%s1409_s18 + $0x8] sm:$0xff] %v912_v57 }
 0x7b3   :  { %919 = vsyncpa [#allocation3], 1 }
 0x7b4   :  { %920 = vsyncpa [#allocation5], 1 }
 0x7b5   :  { %921 = vsyncpa [#allocation8], 1 }
 0x7b6   :  { %922 = vsyncpa [#allocation11], 1 }

</bundles_post_ra>
